<compile_context>
chip_gen: v7x
topology: tpu7x:2x2x1
jax: 0.10.0
libtpu: 0.0.40
codegen_flags: <defaults>
</compile_context>

<pallas_src>
import functools
import math

import jax
import jax.numpy as jnp
from jax import lax
from jax.experimental import pallas as pl
from jax.experimental.pallas import tpu as pltpu

_EPS = 1e-6


def _gelu_tanh(x):
    # tanh-approximate GELU; used identically in kernel and references.
    c = math.sqrt(2.0 / math.pi)
    return 0.5 * x * (1.0 + jnp.tanh(c * (x + 0.044715 * x * x * x)))


def _rmsnorm2d(x, w):
    # x: (M, F), w: (1, F) -> RMS-normalize over the last dim, then scale.
    ms = jnp.mean(x * x, axis=-1, keepdims=True)
    return x * lax.rsqrt(ms + _EPS) * w


def _stacked_layers_kernel(x_ref, wn1_ref, wqkv_ref, wqkn_ref, wn2_ref,
                           wf1_ref, bf1_ref, wf2_ref, bf2_ref,
                           out_ref, resid_ref, *, n_heads):
    layer = pl.program_id(0)
    B, S, D = x_ref.shape
    BS = B * S
    Dh = D // n_heads
    scale = 1.0 / math.sqrt(Dh)

    # Layer 0: load the input activations into the resident residual stream.
    @pl.when(layer == 0)
    def _():
        resid_ref[...] = x_ref[...].reshape(BS, D)

    x = resid_ref[...]                                          # (BS, D) f32

    # ---- norm1 + QKV projection (bf16 operands, f32 accumulation) ----
    xn = _rmsnorm2d(x, wn1_ref[0])
    qkv = jnp.dot(xn.astype(jnp.bfloat16), wqkv_ref[0],
                  preferred_element_type=jnp.float32)           # (BS, 3D)

    # ---- joint qk RMSNorm over the concatenated [q;k] (width 2D) ----
    qk = _rmsnorm2d(qkv[:, :2 * D], wqkn_ref[0])                # (BS, 2D)
    q = qk[:, :D].reshape(B, S, D)
    k = qk[:, D:].reshape(B, S, D)
    v = qkv[:, 2 * D:].reshape(B, S, D)

    # ---- multi-head SDPA (flash path: no out-projection), f32 (tiny) ----
    # Heads: short static loop; each head does B-batched einsums on the MXU.
    # TODO(synk): a single fully head-batched dot would need an in-kernel
    #             (B,S,H,Dh)->(B,H,S,Dh) relayout; at Dh=32, S=16 the gain is
    #             negligible, so the robust per-head loop is kept.
    head_outs = []
    for h in range(n_heads):
        sl = slice(h * Dh, (h + 1) * Dh)
        qh, kh, vh = q[:, :, sl], k[:, :, sl], v[:, :, sl]      # (B, S, Dh)
        s = jnp.einsum("bqd,bkd->bqk", qh, kh,
                       preferred_element_type=jnp.float32) * scale
        s = s - jnp.max(s, axis=-1, keepdims=True)
        e = jnp.exp(s)
        p = e * pl.reciprocal(jnp.sum(e, axis=-1, keepdims=True), approx=True)
        o = jnp.einsum("bqk,bkd->bqd", p, vh,
                       preferred_element_type=jnp.float32)
        head_outs.append(o.reshape(BS, Dh))
    attn = jnp.concatenate(head_outs, axis=-1)                  # (BS, D)

    x1 = attn + x                                               # residual 1

    # ---- norm2 + MLP (dim -> 4*dim -> dim, GELU) ----
    xn2 = _rmsnorm2d(x1, wn2_ref[0])
    hmid = jnp.dot(xn2.astype(jnp.bfloat16), wf1_ref[0],
                   preferred_element_type=jnp.float32) + bf1_ref[0]
    hmid = _gelu_tanh(hmid)
    y = jnp.dot(hmid.astype(jnp.bfloat16), wf2_ref[0],
                preferred_element_type=jnp.float32) + bf2_ref[0]

    out = y + x1                                                # residual 2

    resid_ref[...] = out                                        # carry to l+1
    out_ref[0] = out.reshape(B, S, D).astype(out_ref.dtype)     # hidden state


def stacked_transformer(x, params, n_heads, output_hidden_states=False):
    """StackedTransformer forward.  x: (B, S, D) f32, params: layer-stacked."""
    B, S, D = x.shape
    L = params["wqkv"].shape[0]

    # bf16 weight copies for the MXU GEMMs (halves weight DMA, f32 accumulate).
    wqkv = params["wqkv"].astype(jnp.bfloat16)
    wf1 = params["wf1"].astype(jnp.bfloat16)
    wf2 = params["wf2"].astype(jnp.bfloat16)

    kernel = functools.partial(_stacked_layers_kernel, n_heads=n_heads)

    grid_spec = pltpu.PrefetchScalarGridSpec(
        num_scalar_prefetch=0,
        grid=(L,),
        in_specs=[
            # input activations: constant block index -> DMA'd once, resident.
            pl.BlockSpec((B, S, D), lambda l: (0, 0, 0)),
            # per-layer weights: leading layer axis, next layer prefetched
            # while the current layer computes.
            pl.BlockSpec((1, 1, D), lambda l: (l, 0, 0)),         # norm1 w
            pl.BlockSpec((1, D, 3 * D), lambda l: (l, 0, 0)),     # qkv w (bf16)
            pl.BlockSpec((1, 1, 2 * D), lambda l: (l, 0, 0)),     # qk_norm w
            pl.BlockSpec((1, 1, D), lambda l: (l, 0, 0)),         # norm2 w
            pl.BlockSpec((1, D, 4 * D), lambda l: (l, 0, 0)),     # ffn1 w (bf16)
            pl.BlockSpec((1, 1, 4 * D), lambda l: (l, 0, 0)),     # ffn1 b
            pl.BlockSpec((1, 4 * D, D), lambda l: (l, 0, 0)),     # ffn2 w (bf16)
            pl.BlockSpec((1, 1, D), lambda l: (l, 0, 0)),         # ffn2 b
        ],
        out_specs=pl.BlockSpec((1, B, S, D), lambda l: (l, 0, 0, 0)),
        # Residual stream stays resident in VMEM across all layer steps.
        scratch_shapes=[pltpu.VMEM((B * S, D), jnp.float32)],
    )

    hidden = pl.pallas_call(
        kernel,
        out_shape=jax.ShapeDtypeStruct((L, B, S, D), x.dtype),
        grid_spec=grid_spec,
        compiler_params=pltpu.CompilerParams(
            # Layers are strictly sequential (state carried in VMEM scratch).
            # NOTE: at D=128 all weights fit the default scoped VMEM on every
            # generation; if D scales up, tile wqkv/wf1/wf2 along the big dims
            # and set vmem_limit_bytes explicitly (v5e scoped default 16 MiB,
            # v7x physical VMEM 64 MiB).
            dimension_semantics=("arbitrary",),
        ),
    )(x, params["wn1"], wqkv, params["wqkn"], params["wn2"],
      wf1, params["bf1"], wf2, params["bf2"])

    out = hidden[L - 1]
    if output_hidden_states:
        return out, [hidden[i] for i in range(L)]
    return out


# ----------------------------- pure-JAX references ---------------------------
def _rmsnorm_ref(x, w):
    ms = jnp.mean(x * x, axis=-1, keepdims=True)
    return x * lax.rsqrt(ms + _EPS) * w


def _stacked_ref(x, p, n_heads, matmul_dtype=jnp.float32):
    """Reference forward.  matmul_dtype=bf16 mirrors the kernel's GEMM casts."""
    B, S, D = x.shape
    L = p["wqkv"].shape[0]
    Dh = D // n_heads
    hp = lax.Precision.HIGHEST

    def mm(a, w):
        if matmul_dtype == jnp.float32:
            return jnp.einsum("bsd,df->bsf", a, w, precision=hp)
        return jnp.einsum("bsd,df->bsf",
                          a.astype(jnp.bfloat16), w.astype(jnp.bfloat16),
                          preferred_element_type=jnp.float32)

    for l in range(L):
        resid1 = x
        xn = _rmsnorm_ref(x, p["wn1"][l])
        qkv = mm(xn, p["wqkv"][l])
        qk = _rmsnorm_ref(qkv[..., :2 * D], p["wqkn"][l])
        q, k = qk[..., :D], qk[..., D:]
        v = qkv[..., 2 * D:]
        qh = q.reshape(B, S, n_heads, Dh)
        kh = k.reshape(B, S, n_heads, Dh)
        vh = v.reshape(B, S, n_heads, Dh)
        s = jnp.einsum("bqhd,bkhd->bhqk", qh, kh, precision=hp) / math.sqrt(Dh)
        pa = jax.nn.softmax(s, axis=-1)
        attn = jnp.einsum("bhqk,bkhd->bqhd", pa, vh,
                          precision=hp).reshape(B, S, D)
        x = attn + resid1
        resid2 = x
        xn2 = _rmsnorm_ref(x, p["wn2"][l])
        h = mm(xn2, p["wf1"][l]) + p["bf1"][l]
        h = _gelu_tanh(h)
        y = mm(h, p["wf2"][l]) + p["bf2"][l]
        x = y + resid2
    return x


def _init_stacked_params(key, n_layers, dim):
    ks = jax.random.split(key, 8)
    L = n_layers
    s_qkv = 1.0 / math.sqrt(dim)
    s_f1 = 1.0 / math.sqrt(dim)
    s_f2 = 1.0 / math.sqrt(4 * dim)
    return {
        "wn1": 1.0 + 0.1 * jax.random.normal(ks[0], (L, 1, dim), jnp.float32),
        "wn2": 1.0 + 0.1 * jax.random.normal(ks[1], (L, 1, dim), jnp.float32),
        "wqkn": 1.0 + 0.1 * jax.random.normal(ks[2], (L, 1, 2 * dim), jnp.float32),
        "wqkv": s_qkv * jax.random.normal(ks[3], (L, dim, 3 * dim), jnp.float32),
        "wf1": s_f1 * jax.random.normal(ks[4], (L, dim, 4 * dim), jnp.float32),
        "bf1": 0.01 * jax.random.normal(ks[5], (L, 1, 4 * dim), jnp.float32),
        "wf2": s_f2 * jax.random.normal(ks[6], (L, 4 * dim, dim), jnp.float32),
        "bf2": 0.01 * jax.random.normal(ks[7], (L, 1, dim), jnp.float32),
    }


if __name__ == "__main__":
    key = jax.random.PRNGKey(0)

    # Small but lane-dense config: dim is a multiple of 128 so every matmul
    # operand / activation uses full-width vregs and unmasked stores.
    n_layers, n_heads, dim = 2, 4, 128
    batch, seq = 2, 16

    k_x, k_p = jax.random.split(key)
    x = jax.random.normal(k_x, (batch, seq, dim), jnp.float32)
    params = _init_stacked_params(k_p, n_layers, dim)

    fwd = jax.jit(functools.partial(stacked_transformer, n_heads=n_heads))
    out = jax.block_until_ready(fwd(x, params))

    # Reference 1: matched precision (bf16 GEMM operands, f32 everything else).
    ref_bf16 = _stacked_ref(x, params, n_heads, matmul_dtype=jnp.bfloat16)
    # Reference 2: full-f32 forward pass (sanity on overall semantics).
    ref_f32 = _stacked_ref(x, params, n_heads, matmul_dtype=jnp.float32)

    assert out.shape == (batch, seq, dim)
    assert bool(jnp.all(jnp.isfinite(out)))
    err_m = float(jnp.max(jnp.abs(out - ref_bf16)))
    err_f = float(jnp.max(jnp.abs(out - ref_f32)))
    assert jnp.allclose(out, ref_bf16, rtol=5e-2, atol=5e-2), f"matched err={err_m}"
    assert jnp.allclose(out, ref_f32, rtol=1.5e-1, atol=1.5e-1), f"f32 err={err_f}"

    # output_hidden_states path: last hidden state must equal the final output.
    out2, hiddens = jax.block_until_ready(
        jax.jit(functools.partial(stacked_transformer, n_heads=n_heads,
                                  output_hidden_states=True))(x, params))
    assert len(hiddens) == n_layers
    assert bool(jnp.allclose(out2, hiddens[-1]))

    print("KERNEL_OK")
</pallas_src>

<mosaic_0001>
module attributes {stable_mosaic.version = 11 : i64} {
  func.func @_stacked_layers_kernel(%arg0: i32, %arg1: memref<2x16x128xf32, #tpu.memory_space<vmem>>, %arg2: memref<1x1x128xf32, #tpu.memory_space<vmem>>, %arg3: memref<1x128x384xbf16, #tpu.memory_space<vmem>>, %arg4: memref<1x1x256xf32, #tpu.memory_space<vmem>>, %arg5: memref<1x1x128xf32, #tpu.memory_space<vmem>>, %arg6: memref<1x128x512xbf16, #tpu.memory_space<vmem>>, %arg7: memref<1x1x512xf32, #tpu.memory_space<vmem>>, %arg8: memref<1x512x128xbf16, #tpu.memory_space<vmem>>, %arg9: memref<1x1x128xf32, #tpu.memory_space<vmem>>, %arg10: memref<1x2x16x128xf32, #tpu.memory_space<vmem>>, %arg11: memref<32x128xf32, #tpu.memory_space<vmem>>) attributes {dimension_semantics = [#tpu.dimension_semantics<arbitrary>], iteration_bounds = array<i64: 2>, scalar_prefetch = 0 : i64, scratch_operands = 1 : i64, tpu.core_type = #tpu.core_type<tc>, window_params = [{pipeline_mode = #tpu.pipeline_mode<synchronous>, transform_indices = @transform_0, window_bounds = array<i64: 2, 16, 128>}, {transform_indices = @transform_1, window_bounds = array<i64: 1, 1, 128>}, {transform_indices = @transform_2, window_bounds = array<i64: 1, 128, 384>}, {transform_indices = @transform_3, window_bounds = array<i64: 1, 1, 256>}, {transform_indices = @transform_4, window_bounds = array<i64: 1, 1, 128>}, {transform_indices = @transform_5, window_bounds = array<i64: 1, 128, 512>}, {transform_indices = @transform_6, window_bounds = array<i64: 1, 1, 512>}, {transform_indices = @transform_7, window_bounds = array<i64: 1, 512, 128>}, {transform_indices = @transform_8, window_bounds = array<i64: 1, 1, 128>}, {transform_indices = @transform_9, window_bounds = array<i64: 1, 2, 16, 128>}]} {
    %c0_i32 = arith.constant 0 : i32
    %0 = arith.cmpi eq, %arg0, %c0_i32 : i32
    %1 = arith.extui %0 : i1 to i32
    %c0_i32_0 = arith.constant 0 : i32
    %2 = arith.cmpi ne, %1, %c0_i32_0 : i32
    scf.if %2 {
      %c0_67 = arith.constant 0 : index
      %c0_68 = arith.constant 0 : index
      %c0_69 = arith.constant 0 : index
      %166 = vector.load %arg1[%c0_67, %c0_68, %c0_69] : memref<2x16x128xf32, #tpu.memory_space<vmem>>, vector<2x16x128xf32>
      %167 = vector.shape_cast %166 : vector<2x16x128xf32> to vector<32x128xf32>
      %c0_70 = arith.constant 0 : index
      %c0_71 = arith.constant 0 : index
      %168 = vector.load %arg11[%c0_70, %c0_71] : memref<32x128xf32, #tpu.memory_space<vmem>>, vector<32x128xf32>
      tpu.vector_store %arg11[%c0_70, %c0_71], %167 {strides = array<i32>} : memref<32x128xf32, #tpu.memory_space<vmem>>, vector<32x128xf32>,
    } else {
    }
    %c0 = arith.constant 0 : index
    %c0_1 = arith.constant 0 : index
    %3 = vector.load %arg11[%c0, %c0_1] : memref<32x128xf32, #tpu.memory_space<vmem>>, vector<32x128xf32>
    %c0_2 = arith.constant 0 : index
    %c0_3 = arith.constant 0 : index
    %c0_4 = arith.constant 0 : index
    %4 = vector.load %arg2[%c0_2, %c0_3, %c0_4] : memref<1x1x128xf32, #tpu.memory_space<vmem>>, vector<1x1x128xf32>
    %5 = vector.shape_cast %4 : vector<1x1x128xf32> to vector<1x128xf32>
    %6 = arith.mulf %3, %3 : vector<32x128xf32>
    %cst = arith.constant dense<0.000000e+00> : vector<32xf32>
    %7 = vector.multi_reduction <add>, %6, %cst [1] : vector<32x128xf32> to vector<32xf32>
    %8 = vector.shape_cast %7 : vector<32xf32> to vector<32x1xf32>
    %cst_5 = arith.constant 1.280000e+02 : f32
    %9 = vector.broadcast %cst_5 : f32 to vector<32x1xf32>
    %10 = arith.divf %8, %9 : vector<32x1xf32>
    %cst_6 = arith.constant 9.99999997E-7 : f32
    %11 = vector.broadcast %cst_6 : f32 to vector<32x1xf32>
    %12 = arith.addf %10, %11 : vector<32x1xf32>
    %13 = math.rsqrt %12 : vector<32x1xf32>
    %14 = vector.broadcast %13 : vector<32x1xf32> to vector<32x128xf32>
    %15 = arith.mulf %3, %14 : vector<32x128xf32>
    %16 = vector.broadcast %5 : vector<1x128xf32> to vector<32x128xf32>
    %17 = arith.mulf %15, %16 : vector<32x128xf32>
    %18 = arith.truncf %17 : vector<32x128xf32> to vector<32x128xbf16>
    %c0_7 = arith.constant 0 : index
    %c0_8 = arith.constant 0 : index
    %c0_9 = arith.constant 0 : index
    %19 = vector.load %arg3[%c0_7, %c0_8, %c0_9] : memref<1x128x384xbf16, #tpu.memory_space<vmem>>, vector<1x128x384xbf16>
    %20 = vector.shape_cast %19 : vector<1x128x384xbf16> to vector<128x384xbf16>
    %cst_10 = arith.constant dense<0.000000e+00> : vector<32x384xf32>
    %21 = tpu.matmul %18, %20, %cst_10 {dimension_numbers = #tpu.dot_dimension_numbers<[1], [0], [0], [1], [0, 0, 1, 1], [], []>} : vector<32x128xbf16>, vector<128x384xbf16>, vector<32x384xf32> -> vector<32x384xf32>
    %22 = vector.extract_strided_slice %21 {offsets = [0, 0], sizes = [32, 256], strides = [1, 1]} : vector<32x384xf32> to vector<32x256xf32>
    %c0_11 = arith.constant 0 : index
    %c0_12 = arith.constant 0 : index
    %c0_13 = arith.constant 0 : index
    %23 = vector.load %arg4[%c0_11, %c0_12, %c0_13] : memref<1x1x256xf32, #tpu.memory_space<vmem>>, vector<1x1x256xf32>
    %24 = vector.shape_cast %23 : vector<1x1x256xf32> to vector<1x256xf32>
    %25 = arith.mulf %22, %22 : vector<32x256xf32>
    %cst_14 = arith.constant dense<0.000000e+00> : vector<32xf32>
    %26 = vector.multi_reduction <add>, %25, %cst_14 [1] : vector<32x256xf32> to vector<32xf32>
    %27 = vector.shape_cast %26 : vector<32xf32> to vector<32x1xf32>
    %cst_15 = arith.constant 2.560000e+02 : f32
    %28 = vector.broadcast %cst_15 : f32 to vector<32x1xf32>
    %29 = arith.divf %27, %28 : vector<32x1xf32>
    %cst_16 = arith.constant 9.99999997E-7 : f32
    %30 = vector.broadcast %cst_16 : f32 to vector<32x1xf32>
    %31 = arith.addf %29, %30 : vector<32x1xf32>
    %32 = math.rsqrt %31 : vector<32x1xf32>
    %33 = vector.broadcast %32 : vector<32x1xf32> to vector<32x256xf32>
    %34 = arith.mulf %22, %33 : vector<32x256xf32>
    %35 = vector.broadcast %24 : vector<1x256xf32> to vector<32x256xf32>
    %36 = arith.mulf %34, %35 : vector<32x256xf32>
    %37 = vector.extract_strided_slice %36 {offsets = [0, 0], sizes = [32, 128], strides = [1, 1]} : vector<32x256xf32> to vector<32x128xf32>
    %38 = vector.shape_cast %37 : vector<32x128xf32> to vector<2x16x128xf32>
    %39 = vector.extract_strided_slice %36 {offsets = [0, 128], sizes = [32, 128], strides = [1, 1]} : vector<32x256xf32> to vector<32x128xf32>
    %40 = vector.shape_cast %39 : vector<32x128xf32> to vector<2x16x128xf32>
    %41 = vector.extract_strided_slice %21 {offsets = [0, 256], sizes = [32, 128], strides = [1, 1]} : vector<32x384xf32> to vector<32x128xf32>
    %42 = vector.shape_cast %41 : vector<32x128xf32> to vector<2x16x128xf32>
    %43 = vector.extract_strided_slice %38 {offsets = [0, 0, 0], sizes = [2, 16, 32], strides = [1, 1, 1]} : vector<2x16x128xf32> to vector<2x16x32xf32>
    %44 = vector.extract_strided_slice %40 {offsets = [0, 0, 0], sizes = [2, 16, 32], strides = [1, 1, 1]} : vector<2x16x128xf32> to vector<2x16x32xf32>
    %45 = vector.extract_strided_slice %42 {offsets = [0, 0, 0], sizes = [2, 16, 32], strides = [1, 1, 1]} : vector<2x16x128xf32> to vector<2x16x32xf32>
    "tpu.trace_start"() <{level = 10 : i32, message = "bqd,bkd->bqk"}> : () -> ()
    %cst_17 = arith.constant dense<0.000000e+00> : vector<2x16x16xf32>
    %46 = tpu.matmul %43, %44, %cst_17 {dimension_numbers = #tpu.dot_dimension_numbers<[2], [2], [1], [1], [0, 0, 0, 1, 1, 1], [0], [0]>} : vector<2x16x32xf32>, vector<2x16x32xf32>, vector<2x16x16xf32> -> vector<2x16x16xf32>
    "tpu.trace_stop"() : () -> ()
    %cst_18 = arith.constant 0.176776692 : f32
    %47 = vector.broadcast %cst_18 : f32 to vector<2x16x16xf32>
    %48 = arith.mulf %46, %47 : vector<2x16x16xf32>
    %cst_19 = arith.constant dense<0xFF800000> : vector<2x16xf32>
    %49 = vector.multi_reduction <maximumf>, %48, %cst_19 [2] : vector<2x16x16xf32> to vector<2x16xf32>
    %50 = vector.shape_cast %49 : vector<2x16xf32> to vector<2x16x1xf32>
    %51 = vector.broadcast %50 : vector<2x16x1xf32> to vector<2x16x16xf32>
    %52 = arith.subf %48, %51 : vector<2x16x16xf32>
    %53 = math.exp %52 : vector<2x16x16xf32>
    %cst_20 = arith.constant dense<0.000000e+00> : vector<2x16xf32>
    %54 = vector.multi_reduction <add>, %53, %cst_20 [2] : vector<2x16x16xf32> to vector<2x16xf32>
    %55 = vector.shape_cast %54 : vector<2x16xf32> to vector<2x16x1xf32>
    %56 = tpu.reciprocal %55 {approx = true} : vector<2x16x1xf32> -> vector<2x16x1xf32>
    %57 = vector.broadcast %56 : vector<2x16x1xf32> to vector<2x16x16xf32>
    %58 = arith.mulf %53, %57 : vector<2x16x16xf32>
    "tpu.trace_start"() <{level = 10 : i32, message = "bqk,bkd->bqd"}> : () -> ()
    %cst_21 = arith.constant dense<0.000000e+00> : vector<2x16x32xf32>
    %59 = tpu.matmul %58, %45, %cst_21 {dimension_numbers = #tpu.dot_dimension_numbers<[2], [1], [1], [2], [0, 0, 0, 1, 1, 2], [0], [0]>} : vector<2x16x16xf32>, vector<2x16x32xf32>, vector<2x16x32xf32> -> vector<2x16x32xf32>
    "tpu.trace_stop"() : () -> ()
    %60 = vector.shape_cast %59 : vector<2x16x32xf32> to vector<32x32xf32>
    %61 = vector.extract_strided_slice %38 {offsets = [0, 0, 32], sizes = [2, 16, 32], strides = [1, 1, 1]} : vector<2x16x128xf32> to vector<2x16x32xf32>
    %62 = vector.extract_strided_slice %40 {offsets = [0, 0, 32], sizes = [2, 16, 32], strides = [1, 1, 1]} : vector<2x16x128xf32> to vector<2x16x32xf32>
    %63 = vector.extract_strided_slice %42 {offsets = [0, 0, 32], sizes = [2, 16, 32], strides = [1, 1, 1]} : vector<2x16x128xf32> to vector<2x16x32xf32>
    "tpu.trace_start"() <{level = 10 : i32, message = "bqd,bkd->bqk"}> : () -> ()
    %cst_22 = arith.constant dense<0.000000e+00> : vector<2x16x16xf32>
    %64 = tpu.matmul %61, %62, %cst_22 {dimension_numbers = #tpu.dot_dimension_numbers<[2], [2], [1], [1], [0, 0, 0, 1, 1, 1], [0], [0]>} : vector<2x16x32xf32>, vector<2x16x32xf32>, vector<2x16x16xf32> -> vector<2x16x16xf32>
    "tpu.trace_stop"() : () -> ()
    %cst_23 = arith.constant 0.176776692 : f32
    %65 = vector.broadcast %cst_23 : f32 to vector<2x16x16xf32>
    %66 = arith.mulf %64, %65 : vector<2x16x16xf32>
    %cst_24 = arith.constant dense<0xFF800000> : vector<2x16xf32>
    %67 = vector.multi_reduction <maximumf>, %66, %cst_24 [2] : vector<2x16x16xf32> to vector<2x16xf32>
    %68 = vector.shape_cast %67 : vector<2x16xf32> to vector<2x16x1xf32>
    %69 = vector.broadcast %68 : vector<2x16x1xf32> to vector<2x16x16xf32>
    %70 = arith.subf %66, %69 : vector<2x16x16xf32>
    %71 = math.exp %70 : vector<2x16x16xf32>
    %cst_25 = arith.constant dense<0.000000e+00> : vector<2x16xf32>
    %72 = vector.multi_reduction <add>, %71, %cst_25 [2] : vector<2x16x16xf32> to vector<2x16xf32>
    %73 = vector.shape_cast %72 : vector<2x16xf32> to vector<2x16x1xf32>
    %74 = tpu.reciprocal %73 {approx = true} : vector<2x16x1xf32> -> vector<2x16x1xf32>
    %75 = vector.broadcast %74 : vector<2x16x1xf32> to vector<2x16x16xf32>
    %76 = arith.mulf %71, %75 : vector<2x16x16xf32>
    "tpu.trace_start"() <{level = 10 : i32, message = "bqk,bkd->bqd"}> : () -> ()
    %cst_26 = arith.constant dense<0.000000e+00> : vector<2x16x32xf32>
    %77 = tpu.matmul %76, %63, %cst_26 {dimension_numbers = #tpu.dot_dimension_numbers<[2], [1], [1], [2], [0, 0, 0, 1, 1, 2], [0], [0]>} : vector<2x16x16xf32>, vector<2x16x32xf32>, vector<2x16x32xf32> -> vector<2x16x32xf32>
    "tpu.trace_stop"() : () -> ()
    %78 = vector.shape_cast %77 : vector<2x16x32xf32> to vector<32x32xf32>
    %79 = vector.extract_strided_slice %38 {offsets = [0, 0, 64], sizes = [2, 16, 32], strides = [1, 1, 1]} : vector<2x16x128xf32> to vector<2x16x32xf32>
    %80 = vector.extract_strided_slice %40 {offsets = [0, 0, 64], sizes = [2, 16, 32], strides = [1, 1, 1]} : vector<2x16x128xf32> to vector<2x16x32xf32>
    %81 = vector.extract_strided_slice %42 {offsets = [0, 0, 64], sizes = [2, 16, 32], strides = [1, 1, 1]} : vector<2x16x128xf32> to vector<2x16x32xf32>
    "tpu.trace_start"() <{level = 10 : i32, message = "bqd,bkd->bqk"}> : () -> ()
    %cst_27 = arith.constant dense<0.000000e+00> : vector<2x16x16xf32>
    %82 = tpu.matmul %79, %80, %cst_27 {dimension_numbers = #tpu.dot_dimension_numbers<[2], [2], [1], [1], [0, 0, 0, 1, 1, 1], [0], [0]>} : vector<2x16x32xf32>, vector<2x16x32xf32>, vector<2x16x16xf32> -> vector<2x16x16xf32>
    "tpu.trace_stop"() : () -> ()
    %cst_28 = arith.constant 0.176776692 : f32
    %83 = vector.broadcast %cst_28 : f32 to vector<2x16x16xf32>
    %84 = arith.mulf %82, %83 : vector<2x16x16xf32>
    %cst_29 = arith.constant dense<0xFF800000> : vector<2x16xf32>
    %85 = vector.multi_reduction <maximumf>, %84, %cst_29 [2] : vector<2x16x16xf32> to vector<2x16xf32>
    %86 = vector.shape_cast %85 : vector<2x16xf32> to vector<2x16x1xf32>
    %87 = vector.broadcast %86 : vector<2x16x1xf32> to vector<2x16x16xf32>
    %88 = arith.subf %84, %87 : vector<2x16x16xf32>
    %89 = math.exp %88 : vector<2x16x16xf32>
    %cst_30 = arith.constant dense<0.000000e+00> : vector<2x16xf32>
    %90 = vector.multi_reduction <add>, %89, %cst_30 [2] : vector<2x16x16xf32> to vector<2x16xf32>
    %91 = vector.shape_cast %90 : vector<2x16xf32> to vector<2x16x1xf32>
    %92 = tpu.reciprocal %91 {approx = true} : vector<2x16x1xf32> -> vector<2x16x1xf32>
    %93 = vector.broadcast %92 : vector<2x16x1xf32> to vector<2x16x16xf32>
    %94 = arith.mulf %89, %93 : vector<2x16x16xf32>
    "tpu.trace_start"() <{level = 10 : i32, message = "bqk,bkd->bqd"}> : () -> ()
    %cst_31 = arith.constant dense<0.000000e+00> : vector<2x16x32xf32>
    %95 = tpu.matmul %94, %81, %cst_31 {dimension_numbers = #tpu.dot_dimension_numbers<[2], [1], [1], [2], [0, 0, 0, 1, 1, 2], [0], [0]>} : vector<2x16x16xf32>, vector<2x16x32xf32>, vector<2x16x32xf32> -> vector<2x16x32xf32>
    "tpu.trace_stop"() : () -> ()
    %96 = vector.shape_cast %95 : vector<2x16x32xf32> to vector<32x32xf32>
    %97 = vector.extract_strided_slice %38 {offsets = [0, 0, 96], sizes = [2, 16, 32], strides = [1, 1, 1]} : vector<2x16x128xf32> to vector<2x16x32xf32>
    %98 = vector.extract_strided_slice %40 {offsets = [0, 0, 96], sizes = [2, 16, 32], strides = [1, 1, 1]} : vector<2x16x128xf32> to vector<2x16x32xf32>
    %99 = vector.extract_strided_slice %42 {offsets = [0, 0, 96], sizes = [2, 16, 32], strides = [1, 1, 1]} : vector<2x16x128xf32> to vector<2x16x32xf32>
    "tpu.trace_start"() <{level = 10 : i32, message = "bqd,bkd->bqk"}> : () -> ()
    %cst_32 = arith.constant dense<0.000000e+00> : vector<2x16x16xf32>
    %100 = tpu.matmul %97, %98, %cst_32 {dimension_numbers = #tpu.dot_dimension_numbers<[2], [2], [1], [1], [0, 0, 0, 1, 1, 1], [0], [0]>} : vector<2x16x32xf32>, vector<2x16x32xf32>, vector<2x16x16xf32> -> vector<2x16x16xf32>
    "tpu.trace_stop"() : () -> ()
    %cst_33 = arith.constant 0.176776692 : f32
    %101 = vector.broadcast %cst_33 : f32 to vector<2x16x16xf32>
    %102 = arith.mulf %100, %101 : vector<2x16x16xf32>
    %cst_34 = arith.constant dense<0xFF800000> : vector<2x16xf32>
    %103 = vector.multi_reduction <maximumf>, %102, %cst_34 [2] : vector<2x16x16xf32> to vector<2x16xf32>
    %104 = vector.shape_cast %103 : vector<2x16xf32> to vector<2x16x1xf32>
    %105 = vector.broadcast %104 : vector<2x16x1xf32> to vector<2x16x16xf32>
    %106 = arith.subf %102, %105 : vector<2x16x16xf32>
    %107 = math.exp %106 : vector<2x16x16xf32>
    %cst_35 = arith.constant dense<0.000000e+00> : vector<2x16xf32>
    %108 = vector.multi_reduction <add>, %107, %cst_35 [2] : vector<2x16x16xf32> to vector<2x16xf32>
    %109 = vector.shape_cast %108 : vector<2x16xf32> to vector<2x16x1xf32>
    %110 = tpu.reciprocal %109 {approx = true} : vector<2x16x1xf32> -> vector<2x16x1xf32>
    %111 = vector.broadcast %110 : vector<2x16x1xf32> to vector<2x16x16xf32>
    %112 = arith.mulf %107, %111 : vector<2x16x16xf32>
    "tpu.trace_start"() <{level = 10 : i32, message = "bqk,bkd->bqd"}> : () -> ()
    %cst_36 = arith.constant dense<0.000000e+00> : vector<2x16x32xf32>
    %113 = tpu.matmul %112, %99, %cst_36 {dimension_numbers = #tpu.dot_dimension_numbers<[2], [1], [1], [2], [0, 0, 0, 1, 1, 2], [0], [0]>} : vector<2x16x16xf32>, vector<2x16x32xf32>, vector<2x16x32xf32> -> vector<2x16x32xf32>
    "tpu.trace_stop"() : () -> ()
    %114 = vector.shape_cast %113 : vector<2x16x32xf32> to vector<32x32xf32>
    %115 = tpu.concatenate %60, %78, %96, %114 in 1 : vector<32x32xf32>, vector<32x32xf32>, vector<32x32xf32>, vector<32x32xf32> -> vector<32x128xf32>
    %116 = arith.addf %115, %3 : vector<32x128xf32>
    %c0_37 = arith.constant 0 : index
    %c0_38 = arith.constant 0 : index
    %c0_39 = arith.constant 0 : index
    %117 = vector.load %arg5[%c0_37, %c0_38, %c0_39] : memref<1x1x128xf32, #tpu.memory_space<vmem>>, vector<1x1x128xf32>
    %118 = vector.shape_cast %117 : vector<1x1x128xf32> to vector<1x128xf32>
    %119 = arith.mulf %116, %116 : vector<32x128xf32>
    %cst_40 = arith.constant dense<0.000000e+00> : vector<32xf32>
    %120 = vector.multi_reduction <add>, %119, %cst_40 [1] : vector<32x128xf32> to vector<32xf32>
    %121 = vector.shape_cast %120 : vector<32xf32> to vector<32x1xf32>
    %cst_41 = arith.constant 1.280000e+02 : f32
    %122 = vector.broadcast %cst_41 : f32 to vector<32x1xf32>
    %123 = arith.divf %121, %122 : vector<32x1xf32>
    %cst_42 = arith.constant 9.99999997E-7 : f32
    %124 = vector.broadcast %cst_42 : f32 to vector<32x1xf32>
    %125 = arith.addf %123, %124 : vector<32x1xf32>
    %126 = math.rsqrt %125 : vector<32x1xf32>
    %127 = vector.broadcast %126 : vector<32x1xf32> to vector<32x128xf32>
    %128 = arith.mulf %116, %127 : vector<32x128xf32>
    %129 = vector.broadcast %118 : vector<1x128xf32> to vector<32x128xf32>
    %130 = arith.mulf %128, %129 : vector<32x128xf32>
    %131 = arith.truncf %130 : vector<32x128xf32> to vector<32x128xbf16>
    %c0_43 = arith.constant 0 : index
    %c0_44 = arith.constant 0 : index
    %c0_45 = arith.constant 0 : index
    %132 = vector.load %arg6[%c0_43, %c0_44, %c0_45] : memref<1x128x512xbf16, #tpu.memory_space<vmem>>, vector<1x128x512xbf16>
    %133 = vector.shape_cast %132 : vector<1x128x512xbf16> to vector<128x512xbf16>
    %cst_46 = arith.constant dense<0.000000e+00> : vector<32x512xf32>
    %134 = tpu.matmul %131, %133, %cst_46 {dimension_numbers = #tpu.dot_dimension_numbers<[1], [0], [0], [1], [0, 0, 1, 1], [], []>} : vector<32x128xbf16>, vector<128x512xbf16>, vector<32x512xf32> -> vector<32x512xf32>
    %c0_47 = arith.constant 0 : index
    %c0_48 = arith.constant 0 : index
    %c0_49 = arith.constant 0 : index
    %135 = vector.load %arg7[%c0_47, %c0_48, %c0_49] : memref<1x1x512xf32, #tpu.memory_space<vmem>>, vector<1x1x512xf32>
    %136 = vector.shape_cast %135 : vector<1x1x512xf32> to vector<1x512xf32>
    %137 = vector.broadcast %136 : vector<1x512xf32> to vector<32x512xf32>
    %138 = arith.addf %134, %137 : vector<32x512xf32>
    %cst_50 = arith.constant 5.000000e-01 : f32
    %139 = vector.broadcast %cst_50 : f32 to vector<32x512xf32>
    %140 = arith.mulf %139, %138 : vector<32x512xf32>
    %cst_51 = arith.constant 4.471500e-02 : f32
    %141 = vector.broadcast %cst_51 : f32 to vector<32x512xf32>
    %142 = arith.mulf %141, %138 : vector<32x512xf32>
    %143 = arith.mulf %142, %138 : vector<32x512xf32>
    %144 = arith.mulf %143, %138 : vector<32x512xf32>
    %145 = arith.addf %138, %144 : vector<32x512xf32>
    %cst_52 = arith.constant 0.797884583 : f32
    %146 = vector.broadcast %cst_52 : f32 to vector<32x512xf32>
    %147 = arith.mulf %146, %145 : vector<32x512xf32>
    %148 = math.tanh %147 : vector<32x512xf32>
    %cst_53 = arith.constant 1.000000e+00 : f32
    %149 = vector.broadcast %cst_53 : f32 to vector<32x512xf32>
    %150 = arith.addf %149, %148 : vector<32x512xf32>
    %151 = arith.mulf %140, %150 : vector<32x512xf32>
    %152 = arith.truncf %151 : vector<32x512xf32> to vector<32x512xbf16>
    %c0_54 = arith.constant 0 : index
    %c0_55 = arith.constant 0 : index
    %c0_56 = arith.constant 0 : index
    %153 = vector.load %arg8[%c0_54, %c0_55, %c0_56] : memref<1x512x128xbf16, #tpu.memory_space<vmem>>, vector<1x512x128xbf16>
    %154 = vector.shape_cast %153 : vector<1x512x128xbf16> to vector<512x128xbf16>
    %cst_57 = arith.constant dense<0.000000e+00> : vector<32x128xf32>
    %155 = tpu.matmul %152, %154, %cst_57 {dimension_numbers = #tpu.dot_dimension_numbers<[1], [0], [0], [1], [0, 0, 1, 1], [], []>} : vector<32x512xbf16>, vector<512x128xbf16>, vector<32x128xf32> -> vector<32x128xf32>
    %c0_58 = arith.constant 0 : index
    %c0_59 = arith.constant 0 : index
    %c0_60 = arith.constant 0 : index
    %156 = vector.load %arg9[%c0_58, %c0_59, %c0_60] : memref<1x1x128xf32, #tpu.memory_space<vmem>>, vector<1x1x128xf32>
    %157 = vector.shape_cast %156 : vector<1x1x128xf32> to vector<1x128xf32>
    %158 = vector.broadcast %157 : vector<1x128xf32> to vector<32x128xf32>
    %159 = arith.addf %155, %158 : vector<32x128xf32>
    %160 = arith.addf %159, %116 : vector<32x128xf32>
    %c0_61 = arith.constant 0 : index
    %c0_62 = arith.constant 0 : index
    %161 = vector.load %arg11[%c0_61, %c0_62] : memref<32x128xf32, #tpu.memory_space<vmem>>, vector<32x128xf32>
    tpu.vector_store %arg11[%c0_61, %c0_62], %160 {strides = array<i32>} : memref<32x128xf32, #tpu.memory_space<vmem>>, vector<32x128xf32>,
    %162 = vector.shape_cast %160 : vector<32x128xf32> to vector<2x16x128xf32>
    %c0_63 = arith.constant 0 : index
    %c0_64 = arith.constant 0 : index
    %c0_65 = arith.constant 0 : index
    %c0_66 = arith.constant 0 : index
    %163 = vector.load %arg10[%c0_63, %c0_64, %c0_65, %c0_66] : memref<1x2x16x128xf32, #tpu.memory_space<vmem>>, vector<1x2x16x128xf32>
    %164 = vector.shape_cast %163 : vector<1x2x16x128xf32> to vector<2x16x128xf32>
    %165 = vector.shape_cast %162 : vector<2x16x128xf32> to vector<1x2x16x128xf32>
    tpu.vector_store %arg10[%c0_63, %c0_64, %c0_65, %c0_66], %165 {strides = array<i32>} : memref<1x2x16x128xf32, #tpu.memory_space<vmem>>, vector<1x2x16x128xf32>,
    return
  }
  func.func @transform_0(%arg0: i32) -> (i32, i32, i32) {
    %c0_i32 = arith.constant 0 : i32
    %c0_i32_0 = arith.constant 0 : i32
    %c0_i32_1 = arith.constant 0 : i32
    %c0_i32_2 = arith.constant 0 : i32
    return %c0_i32, %c0_i32_0, %c0_i32_1 : i32, i32, i32
  }
  func.func @transform_1(%arg0: i32) -> (i32, i32, i32) {
    %c0_i32 = arith.constant 0 : i32
    %c0_i32_0 = arith.constant 0 : i32
    %c0_i32_1 = arith.constant 0 : i32
    return %arg0, %c0_i32, %c0_i32_0 : i32, i32, i32
  }
  func.func @transform_2(%arg0: i32) -> (i32, i32, i32) {
    %c0_i32 = arith.constant 0 : i32
    %c0_i32_0 = arith.constant 0 : i32
    %c0_i32_1 = arith.constant 0 : i32
    return %arg0, %c0_i32, %c0_i32_0 : i32, i32, i32
  }
  func.func @transform_3(%arg0: i32) -> (i32, i32, i32) {
    %c0_i32 = arith.constant 0 : i32
    %c0_i32_0 = arith.constant 0 : i32
    %c0_i32_1 = arith.constant 0 : i32
    return %arg0, %c0_i32, %c0_i32_0 : i32, i32, i32
  }
  func.func @transform_4(%arg0: i32) -> (i32, i32, i32) {
    %c0_i32 = arith.constant 0 : i32
    %c0_i32_0 = arith.constant 0 : i32
    %c0_i32_1 = arith.constant 0 : i32
    return %arg0, %c0_i32, %c0_i32_0 : i32, i32, i32
  }
  func.func @transform_5(%arg0: i32) -> (i32, i32, i32) {
    %c0_i32 = arith.constant 0 : i32
    %c0_i32_0 = arith.constant 0 : i32
    %c0_i32_1 = arith.constant 0 : i32
    return %arg0, %c0_i32, %c0_i32_0 : i32, i32, i32
  }
  func.func @transform_6(%arg0: i32) -> (i32, i32, i32) {
    %c0_i32 = arith.constant 0 : i32
    %c0_i32_0 = arith.constant 0 : i32
    %c0_i32_1 = arith.constant 0 : i32
    return %arg0, %c0_i32, %c0_i32_0 : i32, i32, i32
  }
  func.func @transform_7(%arg0: i32) -> (i32, i32, i32) {
    %c0_i32 = arith.constant 0 : i32
    %c0_i32_0 = arith.constant 0 : i32
    %c0_i32_1 = arith.constant 0 : i32
    return %arg0, %c0_i32, %c0_i32_0 : i32, i32, i32
  }
  func.func @transform_8(%arg0: i32) -> (i32, i32, i32) {
    %c0_i32 = arith.constant 0 : i32
    %c0_i32_0 = arith.constant 0 : i32
    %c0_i32_1 = arith.constant 0 : i32
    return %arg0, %c0_i32, %c0_i32_0 : i32, i32, i32
  }
  func.func @transform_9(%arg0: i32) -> (i32, i32, i32, i32) {
    %c0_i32 = arith.constant 0 : i32
    %c0_i32_0 = arith.constant 0 : i32
    %c0_i32_1 = arith.constant 0 : i32
    %c0_i32_2 = arith.constant 0 : i32
    return %arg0, %c0_i32, %c0_i32_0, %c0_i32_1 : i32, i32, i32, i32
  }
}

</mosaic_0001>

<bundles_post_ra>
// kernel: stacked_transformer.1
= control target key start
LH: loop header
LB: loop body
LE: loop exit
PB: predicated region body
PF: predicated region fallthrough
CT: control target
= control target key end

     0   :  { %s4387_s30 = smov 0   ;;  %s4999_s0 = inlined_call_operand.vmem [shape: f32[2,16,128], index: 0, kind: input, shape index: {}]   ;;  %s5000_s1 = inlined_call_operand.vmem [shape: f32[2,1,128], index: 1, kind: input, shape index: {}]   ;;  %s5001_s2 = inlined_call_operand.vmem [shape: bf16[2,128,384], index: 2, kind: input, shape index: {}]   ;;  %s5002_s3 = inlined_call_operand.vmem [shape: f32[2,1,256], index: 3, kind: input, shape index: {}]   ;;  %s5003_s4 = inlined_call_operand.vmem [shape: f32[2,1,128], index: 4, kind: input, shape index: {}]   ;;  %s5004_s5 = inlined_call_operand.vmem [shape: bf16[2,128,512], index: 5, kind: input, shape index: {}]   ;;  %s5005_s6 = inlined_call_operand.vmem [shape: f32[2,1,512], index: 6, kind: input, shape index: {}]   ;;  %s5006_s7 = inlined_call_operand.vmem [shape: bf16[2,512,128], index: 7, kind: input, shape index: {}]   ;;  %s5007_s8 = inlined_call_operand.vmem [shape: f32[2,1,128], index: 8, kind: input, shape index: {}]   ;;  %s5008_s9 = inlined_call_operand.vmem [shape: f32[2,2,16,128], index: 9, kind: output, shape index: {}]  }
   0x1   :  { %5009 = sst [smem:[#allocation3_spill]] %s5001_s2 }
   0x2 LB: > { %s3515_s10 = sadd.s32 4294967295, %s4331_s30   ;;  %p3519_p0 = scmp.ge.s32.totalorder %s4331_s30, 1  ;;  %s4331_s30 = sphi %s4387_s30, %s19_s30  }
   0x3   : > { %p349_p1 = scmp.lt.s32.totalorder %s4331_s30, 3 }
   0x5   : > { %p350_p2 = pnand %p3519_p0, %p349_p1 }
   0x6   : > { %p412_p3 = scmp.lt.s32.totalorder (!%p350_p2), %s3515_s10, 1  ;;  %s5010_s2 = sld [smem:[#allocation3_spill]] (!%p350_p2) }
   0x7   : > { %353 = sbr.rel (%p350_p2) target bundleno = 3818 (0xeea), region = 56  ;;  %p3529_p4 = scmp.ne.s32.totalorder (!%p350_p2), %s3515_s10, 0 }
   0xe   : > { %s4395_s11 = scalar_select %p412_p3, %s3515_s10, 1 }
   0xf   : > { %v454_v0 = vld [vmem:[%s4999_s0] sm:$0xff] (!%p3529_p4)  ;;  %v455_v1 = vld [vmem:[%s4999_s0 + $0x8] sm:$0xff] (!%p3529_p4)  ;;  %v456_v2 = vld [vmem:[%s4999_s0 + $0x10] sm:$0xff] (!%p3529_p4) }
  0x10   : > { %s4016_s15 = smul.u32 192, %s4395_s11  ;;  %s3521_s16 = sshll.u32 %s4395_s11, 1  ;;  %458 = vst [vmem:[#allocation2] sm:$0xff] (!%p3529_p4), %v454_v0  ;;  %459 = vst [vmem:[#allocation2 + $0x8] sm:$0xff] (!%p3529_p4), %v455_v1  ;;  %v457_v3 = vld [vmem:[%s4999_s0 + $0x18] sm:$0xff] (!%p3529_p4) }
  0x11   : > { %s4415_s25 = scalar_lea.vmem %s5002_s3, %s3521_s16  ;;  %s3671_s26 = sshll.u32 %s4395_s11, 8  ;;  %460 = vst [vmem:[#allocation2 + $0x10] sm:$0xff] (!%p3529_p4), %v456_v2  ;;  %461 = vst [vmem:[#allocation2 + $0x18] sm:$0xff] (!%p3529_p4), %v457_v3 }
  0x12   : > { %s4410_s22 = scalar_lea.vmem %s5010_s2, %s4016_s15  ;;  %s3524_s27 = sshll.u32 %s4395_s11, 2 }
  0x13   : > { %s4422_s12 = scalar_lea.vmem %s5004_s5, %s3671_s26  ;;  %s4427_s18 = scalar_lea.vmem %s5005_s6, %s3524_s27 }
  0x14   : > { %s4432_s21 = scalar_lea.vmem %s5006_s7, %s3671_s26  ;;  %s443_s24 = scalar_lea.vmem %s5007_s8, %s4395_s11 }
  0x15   : > { %s3673_s19 = sshll.u32 %s4395_s11, 5  ;;  %453 = sbr.rel (%p3529_p4) target bundleno = 28 (0x1c), region = 60 }
  0x16   : > { %s4442_s28 = scalar_lea.vmem %s5008_s9, %s3673_s19 }
  0x1c PF: > { %v4456_v4 = vld [vmem:[#allocation2] sm:$0xff]  ;;  %v4458_v5 = vld [vmem:[#allocation2 + $0x10] sm:$0xff]  ;;  %v4460_v6 = vld [vmem:[#allocation2 + $0x8] sm:$0xff]  ;;  %v4333_v34 = vmov 0   ;;  %vm831_vm0 = vcmask 261120   ;;  %vm1010_vm2 = vcmask 130048  }
  0x1d   : > { %v467_v7 = vmul.f32 %v4456_v4, %v4456_v4  ;;  %v469_v8 = vmul.f32 %v4458_v5, %v4458_v5  ;;  %v4466_v9 = vld [vmem:[#allocation2 + $0x18] sm:$0xff]  ;;  %v4089_v10 = vld [vmem:[%s4410_s22 + $0x4] ss:$12 sps:$4 sm:$0xff]   ;;  %v4091_v11 = vld [vmem:[%s4410_s22] ss:$12 sps:$4 sm:$0xff]   ;;  %v468_v12 = vmul.f32 %v4460_v6, %v4460_v6  ;;  %700 = vmatprep.mubr.bf16.mxu0 %v4333_v34  ;;  %s4335_s15 = smov 64  }
  0x1e   : > { %v470_v13 = vmul.f32 %v4466_v9, %v4466_v9  ;;  %v4092_v14 = vld [vmem:[%s4410_s22 + $0x8] ss:$12 sps:$4 sm:$0xff]   ;;  %668 = vmatprep.subr.bf16.mxu0 %v4089_v10  ;;  %v4095_v16 = vld [vmem:[%s4410_s22 + $0x18] ss:$12 sps:$4 sm:$0xff]   ;;  %v4096_v17 = vld [vmem:[%s4410_s22 + $0x20] ss:$12 sps:$4 sm:$0xff]  }
  0x1f   : > { %471 = vadd.xlane.f32.xlu0 %v467_v7  ;;  %475 = vadd.xlane.f32.xlu1 %v469_v8  ;;  %v4093_v15 = vld [vmem:[%s4410_s22 + $0x1c] ss:$12 sps:$4 sm:$0xff]   ;;  %v4097_v18 = vld [vmem:[%s4410_s22 + $0x34] ss:$12 sps:$4 sm:$0xff]   ;;  %v4100_v20 = vld [vmem:[%s4410_s22 + $0x38] ss:$12 sps:$4 sm:$0xff]  }
  0x20   : > { %669 = vmatpush1.bf16.msra.mxu0 %v4091_v11  ;;  %3804 = vmatprep.subr.bf16.mxu1 %v4092_v14  ;;  %v4099_v19 = vld [vmem:[%s4410_s22 + $0x30] ss:$12 sps:$4 sm:$0xff]   ;;  %v4101_v21 = vld [vmem:[%s4410_s22 + $0x4c] ss:$12 sps:$4 sm:$0xff]   ;;  %v4103_v22 = vld [vmem:[%s4410_s22 + $0x48] ss:$12 sps:$4 sm:$0xff]  }
  0x21   : > { %3805 = vmatpush3.bf16.msra.mxu1 %v4092_v14  ;;  %670 = vmatprep.subr.bf16.mxu0 %v4093_v15  ;;  %v4104_v23 = vld [vmem:[%s4410_s22 + $0x50] ss:$12 sps:$4 sm:$0xff]   ;;  %v4107_v25 = vld [vmem:[%s4410_s22 + $0x60] ss:$12 sps:$4 sm:$0xff]   ;;  %v4108_v26 = vld [vmem:[%s4410_s22 + $0x68] ss:$12 sps:$4 sm:$0xff]  }
  0x22   : > { %3806 = vmatprep.subr.bf16.mxu1 %v4096_v17  ;;  %v4105_v24 = vld [vmem:[%s4410_s22 + $0x64] ss:$12 sps:$4 sm:$0xff]   ;;  %v4109_v27 = vld [vmem:[%s4410_s22 + $0x7c] ss:$12 sps:$4 sm:$0xff]   ;;  %v4112_v28 = vld [vmem:[%s4410_s22 + $0x80] ss:$12 sps:$4 sm:$0xff]  }
  0x23   : > { %473 = vadd.xlane.f32.xlu0 %v468_v12  ;;  %477 = vadd.xlane.f32.xlu1 %v470_v13  ;;  %v4111_v29 = vld [vmem:[%s4410_s22 + $0x78] ss:$12 sps:$4 sm:$0xff]   ;;  %v4113_v30 = vld [vmem:[%s4410_s22 + $0x94] ss:$12 sps:$4 sm:$0xff]   ;;  %v4115_v31 = vld [vmem:[%s4410_s22 + $0x90] ss:$12 sps:$4 sm:$0xff]  }
  0x24   : > { %671 = vmatpush1.bf16.msra.mxu0 %v4095_v16  ;;  %v4116_v32 = vld [vmem:[%s4410_s22 + $0x98] ss:$12 sps:$4 sm:$0xff]   ;;  %v4120_v35 = vld [vmem:[%s4410_s22 + $0xb0] ss:$12 sps:$4 sm:$0xff]   ;;  %v4119_v36 = vld [vmem:[%s4410_s22 + $0xa8] ss:$12 sps:$4 sm:$0xff]  }
  0x25   : > { %3807 = vmatpush3.bf16.msra.mxu1 %v4096_v17  ;;  %672 = vmatprep.subr.bf16.mxu0 %v4097_v18  ;;  %v4117_v33 = vld [vmem:[%s4410_s22 + $0xac] ss:$12 sps:$4 sm:$0xff]   ;;  %s5011_s22 = scalar_lea.vmem %s5000_s1, %s4395_s11  ;;  %vm4538_vm1 = vmpackc.low %vm831_vm0, %vm831_vm0  ;;  %s4336_s23 = smov 32   ;;  %vm2485_vm3 = vcmask 523264   ;;  %vm2490_vm4 = vcmask 785408  }
  0x26   : > { %3808 = vmatprep.subr.bf16.mxu1 %v4100_v20  ;;  %v3530_v54 = vld [vmem:[%s5011_s22] ss:$0 sm:$0xff] }
  0x28   : > { %673 = vmatpush1.bf16.msra.mxu0 %v4099_v19 }
  0x29   : > { %3809 = vmatpush3.bf16.msra.mxu1 %v4100_v20  ;;  %674 = vmatprep.subr.bf16.mxu0 %v4101_v21 }
  0x2a   : > { %3810 = vmatprep.subr.bf16.mxu1 %v4104_v23 }
  0x2c   : > { %675 = vmatpush1.bf16.msra.mxu0 %v4103_v22 }
  0x2d   : > { %3811 = vmatpush3.bf16.msra.mxu1 %v4104_v23  ;;  %676 = vmatprep.subr.bf16.mxu0 %v4105_v24 }
  0x2e   : > { %3812 = vmatprep.subr.bf16.mxu1 %v4108_v26 }
  0x30   : > { %677 = vmatpush1.bf16.msra.mxu0 %v4107_v25 }
  0x31   : > { %3813 = vmatpush3.bf16.msra.mxu1 %v4108_v26  ;;  %678 = vmatprep.subr.bf16.mxu0 %v4109_v27 }
  0x32   : > { %3814 = vmatprep.subr.bf16.mxu1 %v4112_v28 }
  0x34   : > { %679 = vmatpush1.bf16.msra.mxu0 %v4111_v29 }
  0x35   : > { %3815 = vmatpush3.bf16.msra.mxu1 %v4112_v28  ;;  %680 = vmatprep.subr.bf16.mxu0 %v4113_v30  ;;  %v813_v30 = vlaneseq }
  0x36   : > { %3816 = vmatprep.subr.bf16.mxu1 %v4116_v32 }
  0x38   : > { %681 = vmatpush1.bf16.msra.mxu0 %v4115_v31 }
  0x39   : > { %3817 = vmatpush3.bf16.msra.mxu1 %v4116_v32  ;;  %682 = vmatprep.subr.bf16.mxu0 %v4117_v33 }
  0x3a   : > { %3818 = vmatprep.subr.bf16.mxu1 %v4120_v35 }
  0x3c   : > { %683 = vmatpush1.bf16.msra.mxu0 %v4119_v36  ;;  %v4523_v36 = vshrl.u32 %v813_v30, 7 }
  0x3d   : > { %3819 = vmatpush3.bf16.msra.mxu1 %v4120_v35 }
  0xac   : > { %v472_v37 = vpop.xlane.xlu0 %471  ;;  %v476_v38 = vpop.xlane.xlu1 %475 }
  0xad   : > { %v480_v39 = vmul.f32 0.0078125, %v472_v37  ;;  %v482_v40 = vmul.f32 0.0078125, %v476_v38 }
  0xaf   : > { %v484_v41 = vadd.f32 1e-06, %v480_v39  ;;  %v486_v42 = vadd.f32 1e-06, %v482_v40  ;;  %v815_v39 = vsub.s32 0, %v4523_v36 }
  0xb0   : > { %v474_v43 = vpop.xlane.xlu0 %473  ;;  %v478_v44 = vpop.xlane.xlu1 %477 }
  0xb1   : > { %4201 = vrsqrt.f32 %v484_v41  ;;  %v481_v45 = vmul.f32 0.0078125, %v474_v43  ;;  %v483_v46 = vmul.f32 0.0078125, %v478_v44  ;;  %v770_v41 = vld [vmem:[%s4415_s25] sm:$0x3]  ;;  %v819_v44 = vsub.s32 1, %v4523_v36  ;;  %s4334_s25 = smov 96  }
  0xb2   : > { %4203 = vrsqrt.f32 %v486_v42 }
  0xb3   : > { %v485_v47 = vadd.f32 1e-06, %v481_v45  ;;  %v487_v48 = vadd.f32 1e-06, %v483_v46  ;;  %v816_v46 = vrot.slane %v770_v41, %v815_v39 }
  0xb5   : > { %4205 = vrsqrt.f32 %v485_v47 }
  0xb6   : > { %4207 = vrsqrt.f32 %v487_v48  ;;  %v820_v48 = vrot.slane %v770_v41, %v819_v44 }
  0xbb   : > { %v4202_v49 = vpop.eup %4201 }
  0xbc   : > { %v4204_v50 = vpop.eup %4203  ;;  %v492_v52 = vmul.f32 %v4202_v49, %v4456_v4 }
  0xbd   : > { %v494_v51 = vmul.f32 %v4204_v50, %v4458_v5 }
  0xbe   : > { %v502_v59 = vmul.f32 %v3530_v54, %v492_v52 }
  0xbf   : > { %v4206_v53 = vpop.eup %4205  ;;  %v504_v58 = vmul.f32 %v3530_v54, %v494_v51 }
  0xc0   : > { %v4208_v55 = vpop.eup %4207  ;;  %v493_v56 = vmul.f32 %v4206_v53, %v4460_v6 }
  0xc1   : > { %v495_v57 = vmul.f32 %v4208_v55, %v4466_v9 }
  0xc2   : > { %v503_v60 = vmul.f32 %v3530_v54, %v493_v56 }
  0xc3   : > { %v505_v61 = vmul.f32 %v3530_v54, %v495_v57 }
  0xc4   : > { %v506_v62 = vpack.c.bf16 %v503_v60, %v502_v59 }
  0xc5   : > { %v507_v63 = vpack.c.bf16 %v505_v61, %v504_v58 }
  0xc6   : > { %701 = vmatmul.mubr.bf16.vlgmr.msra.gmra.mrb[0].mxu0 %v506_v62  ;;  %3820 = vmatprep.mubr.bf16.mxu1 %v506_v62 }
  0xc7   : > { %3821 = vmatmul.mubr.bf16.vlgmr.msra.gmra.mrb[0].mxu1 %v507_v63  ;;  %710 = vmatprep.mubr.bf16.mxu0 %v4333_v34 }
  0xce   : > { %711 = vmatmul.mubr.bf16.gmra.mrb[4].mxu0 %v507_v63 }
 0x199   : > { %v702_v0 = vpop.f32.mrb[0].mxu0 }
 0x19a   : > { %v771_v1 = vmul.f32 %v702_v0, %v702_v0  ;;  %v704_v2 = vpop.f32.mrb[1].mxu0  ;;  %v3822_v3 = vpop.f32.mrb[0].mxu1 }
 0x19b   : > { %v772_v4 = vmul.f32 %v704_v2, %v704_v2  ;;  %v4507_v5 = vpop.f32.mrb[2].mxu0  ;;  %v755_v6 = vpop.f32.mrb[1].mxu1 }
 0x19c   : > { %v773_v7 = vmul.f32 %v4507_v5, %v4507_v5  ;;  %v708_v8 = vpop.f32.mrb[3].mxu0  ;;  %v3823_v9 = vpop.f32.mrb[2].mxu1 }
 0x19d   : > { %v774_v10 = vmul.f32 %v708_v8, %v708_v8  ;;  %v758_v11 = vpop.f32.mrb[3].mxu1  ;;  %v779_v12 = vadd.f32 %v772_v4, %v771_v1  ;;  %v4511_v13 = vpack.c.bf16 %v3823_v9, %v3822_v3  ;;  %v4513_v14 = vpack.i.bf16 %v3823_v9, %v3822_v3 }
 0x19e   : > { %v4515_v15 = vpack.c.bf16 %v758_v11, %v755_v6  ;;  %v4517_v16 = vpack.i.bf16 %v758_v11, %v755_v6 }
 0x19f   : > { %780 = vadd.xlane.f32.xlu0 %v779_v12  ;;  %v782_v17 = vadd.f32 %v774_v10, %v773_v7 }
 0x1a1   : > { %783 = vadd.xlane.f32.xlu1 %v782_v17  ;;  %v712_v18 = vpop.f32.mrb[4].mxu0 }
 0x1a2   : > { %v775_v19 = vmul.f32 %v712_v18, %v712_v18  ;;  %v714_v20 = vpop.f32.mrb[5].mxu0 }
 0x1a3   : > { %v776_v21 = vmul.f32 %v714_v20, %v714_v20  ;;  %v4519_v22 = vpop.f32.mrb[6].mxu0 }
 0x1a4   : > { %v777_v23 = vmul.f32 %v4519_v22, %v4519_v22  ;;  %v718_v24 = vpop.f32.mrb[7].mxu0 }
 0x1a5   : > { %v778_v25 = vmul.f32 %v718_v24, %v718_v24  ;;  %v785_v26 = vadd.f32 %v776_v21, %v775_v19 }
 0x1a7   : > { %786 = vadd.xlane.f32.xlu0 %v785_v26  ;;  %v788_v27 = vadd.f32 %v778_v25, %v777_v23 }
 0x1a9   : > { %789 = vadd.xlane.f32.xlu1 %v788_v27 }
 0x22c   : > { %v781_v28 = vpop.xlane.xlu0 %780 }
 0x22d   : > { %v792_v29 = vmul.f32 0.00390625, %v781_v28 }
 0x22e   : > { %v784_v31 = vpop.xlane.xlu1 %783 }
 0x22f   : > { %v796_v32 = vadd.f32 1e-06, %v792_v29  ;;  %v793_v33 = vmul.f32 0.00390625, %v784_v31 }
 0x231   : > { %4209 = vrsqrt.f32 %v796_v32  ;;  %v797_v35 = vadd.f32 1e-06, %v793_v33 }
 0x233   : > { %4211 = vrsqrt.f32 %v797_v35 }
 0x234   : > { %v787_v37 = vpop.xlane.xlu0 %786 }
 0x235   : > { %v794_v38 = vmul.f32 0.00390625, %v787_v37 }
 0x236   : > { %v790_v40 = vpop.xlane.xlu1 %789 }
 0x237   : > { %v798_v42 = vadd.f32 1e-06, %v794_v38  ;;  %v795_v43 = vmul.f32 0.00390625, %v790_v40 }
 0x239   : > { %4213 = vrsqrt.f32 %v798_v42  ;;  %v799_v45 = vadd.f32 1e-06, %v795_v43 }
 0x23b   : > { %v4210_v47 = vpop.eup %4209  ;;  %4215 = vrsqrt.f32 %v799_v45 }
 0x23c   : > { %v805_v49 = vmul.f32 %v4210_v47, %v704_v2  ;;  %v804_v50 = vmul.f32 %v4210_v47, %v702_v0 }
 0x23d   : > { %v4212_v51 = vpop.eup %4211 }
 0x23e   : > { %v807_v52 = vmul.f32 %v4212_v51, %v708_v8  ;;  %v4532_v53 = vmul.f32 %v816_v46, %v804_v50  ;;  %v824_v54 = vmul.f32 %v820_v48, %v805_v49  ;;  %v806_v63 = vmul.f32 %v4212_v51, %v4507_v5 }
 0x240   : > { %v826_v55 = vmul.f32 %v820_v48, %v807_v52  ;;  %3828 = vmatprep.mubr.msk.f32.mxu1 %vm831_vm0, %v4532_v53  ;;  %v4554_v4 = vmul.f32 %v816_v46, %v806_v63 }
 0x242   : > { %v3936_v57 = vpack.c.bf16 %v826_v55, %v824_v54  ;;  %v4542_v58 = vpack.i.bf16 %v826_v55, %v824_v54 }
 0x243   : > { %v4214_v59 = vpop.eup %4213 }
 0x244   : > { %v809_v60 = vmul.f32 %v4214_v59, %v714_v20  ;;  %3938 = vmatprep.subr.msk.bf16.mxu1 %vm4538_vm1, %v3936_v57  ;;  %v808_v61 = vmul.f32 %v4214_v59, %v712_v18 }
 0x245   : > { %v4216_v62 = vpop.eup %4215  ;;  %3941 = vmatpush3.bf16.xpose.msk.msra.mxu1 %vm4538_vm1, %v3936_v57 }
 0x246   : > { %v811_v0 = vmul.f32 %v4216_v62, %v718_v24  ;;  %3949 = vmatprep.subr.bf16.mxu1 %v4515_v15  ;;  %v4550_v1 = vmul.f32 %v816_v46, %v808_v61  ;;  %v828_v2 = vmul.f32 %v820_v48, %v809_v60  ;;  %v810_v5 = vmul.f32 %v4216_v62, %v4519_v22 }
 0x248   : > { %v830_v3 = vmul.f32 %v820_v48, %v811_v0  ;;  %3835 = vmatprep.mubr.msk.f32.mxu0 %vm831_vm0, %v4550_v1  ;;  %v4567_v8 = vmul.f32 %v816_v46, %v810_v5 }
 0x24a   : > { %v3942_v6 = vpack.c.bf16 %v830_v3, %v828_v2  ;;  %v4556_v7 = vpack.i.bf16 %v830_v3, %v828_v2 }
 0x24c   : > { %3829 = vmatmul.mubr.msk.f32.vlgmr.msra.gmra.mrb[4].mxu1 %vm831_vm0, %v4554_v4  ;;  %3944 = vmatprep.subr.msk.bf16.mxu0 %vm4538_vm1, %v3942_v6 }
 0x24d   : > { %3947 = vmatpush3.bf16.xpose.msk.msra.mxu0 %vm4538_vm1, %v3942_v6  ;;  %3951 = vmatpush3.bf16.msra.mxu1 %v4515_v15 }
 0x24e   : > { %3953 = vmatprep.subr.bf16.mxu1 %v4511_v13 }
 0x254   : > { %3836 = vmatmul.mubr.msk.f32.vlgmr.msra.gmra.mrb[8].mxu0 %vm831_vm0, %v4567_v8 }
 0x31f   : > { %v3830_v9 = vpop.f32.mrb[4].mxu1 }
 0x320   : > { %v1007_v10 = vmul.f32 0.17677669, %v3830_v9  ;;  %v910_v11 = vpop.f32.mrb[5].mxu1 }
 0x321   : > { %v1006_v12 = vmul.f32 0.17677669, %v910_v11 }
 0x322   : > { %v1014_v17 = vsel %vm1010_vm2, %v1007_v10, -inf }
 0x323   : > { %1015 = vmax.xlane.f32.xlu1 %v1014_v17  ;;  %v1011_v18 = vsel %vm1010_vm2, %v1006_v12, -inf }
 0x324   : > { %1012 = vmax.xlane.f32.xlu0 %v1011_v18 }
 0x327   : > { %v3837_v15 = vpop.f32.mrb[8].mxu0 }
 0x328   : > { %v1009_v19 = vmul.f32 0.17677669, %v3837_v15  ;;  %v997_v20 = vpop.f32.mrb[9].mxu0 }
 0x329   : > { %v1008_v21 = vmul.f32 0.17677669, %v997_v20 }
 0x32a   : > { %v1020_v22 = vsel %vm1010_vm2, %v1009_v19, -inf }
 0x32b   : > { %1021 = vmax.xlane.f32.xlu1 %v1020_v22  ;;  %v1017_v23 = vsel %vm1010_vm2, %v1008_v21, -inf }
 0x32c   : > { %1018 = vmax.xlane.f32.xlu0 %v1017_v23 }
 0x3b0   : > { %v1016_v24 = vpop.xlane.xlu1 %1015 }
 0x3b1   : > { %v1024_v25 = vsub.f32 %v1007_v10, %v1016_v24  ;;  %v1013_v26 = vpop.xlane.xlu0 %1012 }
 0x3b2   : > { %v1023_v27 = vsub.f32 %v1006_v12, %v1013_v26 }
 0x3b3   : > { %v1029_v28 = vmul.f32 1.442695, %v1024_v25 }
 0x3b4   : > { %v1027_v29 = vmul.f32 1.442695, %v1023_v27 }
 0x3b5   : > { %4217 = vpow2.f32 %v1029_v28 }
 0x3b6   : > { %4219 = vpow2.f32 %v1027_v29 }
 0x3b8   : > { %v1022_v30 = vpop.xlane.xlu1 %1021 }
 0x3b9   : > { %v1026_v31 = vsub.f32 %v1009_v19, %v1022_v30  ;;  %v1019_v32 = vpop.xlane.xlu0 %1018 }
 0x3ba   : > { %v1025_v33 = vsub.f32 %v1008_v21, %v1019_v32 }
 0x3bb   : > { %v1033_v35 = vmul.f32 1.442695, %v1026_v31 }
 0x3bc   : > { %v1031_v37 = vmul.f32 1.442695, %v1025_v33 }
 0x3bd   : > { %4221 = vpow2.f32 %v1033_v35 }
 0x3be   : > { %4223 = vpow2.f32 %v1031_v37 }
 0x3bf   : > { %v4218_v38 = vpop.eup %4217 }
 0x3c0   : > { %v4220_v40 = vpop.eup %4219  ;;  %v1038_v41 = vsel %vm1010_vm2, %v4218_v38, 0.0 }
 0x3c1   : > { %1039 = vadd.xlane.f32.xlu1 %v1038_v41  ;;  %v1035_v42 = vsel %vm1010_vm2, %v4220_v40, 0.0 }
 0x3c2   : > { %1036 = vadd.xlane.f32.xlu0 %v1035_v42 }
 0x3c7   : > { %v4222_v43 = vpop.eup %4221 }
 0x3c8   : > { %v4224_v45 = vpop.eup %4223  ;;  %v1044_v46 = vsel %vm1010_vm2, %v4222_v43, 0.0 }
 0x3c9   : > { %1045 = vadd.xlane.f32.xlu1 %v1044_v46  ;;  %v1041_v47 = vsel %vm1010_vm2, %v4224_v45, 0.0 }
 0x3ca   : > { %1042 = vadd.xlane.f32.xlu0 %v1041_v47 }
 0x3da   : > { %4035 = vrot.lane.b32.xlu1 %v4556_v7, %s4334_s25 }
 0x3de   : > { %1217 = vrot.lane.b32.xlu1 %v4532_v53, %s4334_s25 }
 0x3e0   : > { %4030 = vrot.lane.b32.xlu0 %v4542_v58, %s4334_s25 }
 0x3e2   : > { %1219 = vrot.lane.b32.xlu1 %v4554_v4, %s4334_s25 }
 0x3e4   : > { %1308 = vrot.lane.b32.xlu0 %v4550_v1, %s4334_s25 }
 0x3e6   : > { %1310 = vrot.lane.b32.xlu1 %v4567_v8, %s4334_s25 }
 0x44e   : > { %v1040_v48 = vpop.xlane.xlu1 %1039 }
 0x44f   : > { %4225 = vrcp.f32 %v1040_v48  ;;  %v1037_v49 = vpop.xlane.xlu0 %1036 }
 0x450   : > { %4227 = vrcp.f32 %v1037_v49 }
 0x456   : > { %v1046_v50 = vpop.xlane.xlu1 %1045 }
 0x457   : > { %4229 = vrcp.f32 %v1046_v50  ;;  %v1043_v51 = vpop.xlane.xlu0 %1042 }
 0x458   : > { %4231 = vrcp.f32 %v1043_v51 }
 0x459   : > { %v4226_v52 = vpop.eup %4225 }
 0x45a   : > { %v4228_v54 = vpop.eup %4227  ;;  %v4036_v55 = vpop.permute.xlu1 %4035  ;;  %v1052_v62 = vmul.f32 %v4226_v52, %v4218_v38 }
 0x45b   : > { %v4038_v57 = vunpack.i.h.bf16 %v4036_v55  ;;  %v4037_v59 = vunpack.i.l.bf16 %v4036_v55  ;;  %v4031_v60 = vpop.permute.xlu0 %4030  ;;  %v1051_v61 = vmul.f32 %v4228_v54, %v4220_v40 }
 0x45c   : > { %v4033_v63 = vunpack.i.h.bf16 %v4031_v60  ;;  %v4032_v0 = vunpack.i.l.bf16 %v4031_v60 }
 0x45d   : > { %v3962_v2 = vpack.c.bf16 %v4038_v57, %v4037_v59  ;;  %3842 = vmatprep.mubr.msk.f32.mxu1 %vm1010_vm2, %v1051_v61 }
 0x45e   : > { %v3956_v3 = vpack.c.bf16 %v4033_v63, %v4032_v0  ;;  %3843 = vmatmul.mubr.msk.f32.vlgmr.msra.gmra.mrb[6].mxu1 %vm1010_vm2, %v1052_v62  ;;  %v1218_v6 = vpop.permute.xlu1 %1217 }
 0x45f   : > { %3955 = vmatpush3.bf16.msra.mxu1 %v4511_v13  ;;  %3856 = vmatprep.mubr.msk.f32.mxu0 %vm831_vm0, %v1218_v6  ;;  %v1309_v12 = vpop.permute.xlu0 %1308 }
 0x460   : > { %3964 = vmatprep.subr.msk.bf16.mxu1 %vm4538_vm1, %v3962_v2  ;;  %3958 = vmatprep.subr.msk.bf16.mxu0 %vm4538_vm1, %v3956_v3 }
 0x461   : > { %v4230_v5 = vpop.eup %4229  ;;  %3961 = vmatpush3.bf16.xpose.msk.msra.mxu0 %vm4538_vm1, %v3956_v3 }
 0x462   : > { %v4232_v9 = vpop.eup %4231  ;;  %v1054_v11 = vmul.f32 %v4230_v5, %v4222_v43  ;;  %v1220_v13 = vpop.permute.xlu1 %1219 }
 0x463   : > { %v1053_v10 = vmul.f32 %v4232_v9, %v4224_v45 }
 0x465   : > { %3849 = vmatprep.mubr.msk.f32.mxu1 %vm1010_vm2, %v1053_v10 }
 0x466   : > { %3850 = vmatmul.mubr.msk.f32.vlgmr.msra.gmra.mrb[8].mxu1 %vm1010_vm2, %v1054_v11  ;;  %v1311_v17 = vpop.permute.xlu1 %1310 }
 0x467   : > { %3863 = vmatprep.mubr.msk.f32.mxu1 %vm831_vm0, %v1309_v12 }
 0x468   : > { %3967 = vmatpush3.bf16.xpose.msk.msra.mxu1 %vm4538_vm1, %v3962_v2  ;;  %3857 = vmatmul.mubr.msk.f32.vlgmr.msra.gmra.mrb[10].mxu0 %vm831_vm0, %v1220_v13 }
 0x46f   : > { %3864 = vmatmul.mubr.msk.f32.vlgmr.msra.gmra.mrb[10].mxu1 %vm831_vm0, %v1311_v17 }
 0x531   : > { %v4608_v18 = vpop.f32.mrb[6].mxu1 }
 0x532   : > { %v4610_v15 = vpop.f32.mrb[7].mxu1 }
 0x539   : > { %v4612_v19 = vpop.f32.mrb[8].mxu1 }
 0x53a   : > { %v4614_v20 = vpop.f32.mrb[9].mxu1 }
 0x53b   : > { %v3858_v21 = vpop.f32.mrb[10].mxu0 }
 0x53c   : > { %v1400_v22 = vmul.f32 0.17677669, %v3858_v21  ;;  %v1299_v23 = vpop.f32.mrb[11].mxu0 }
 0x53d   : > { %v1399_v24 = vmul.f32 0.17677669, %v1299_v23 }
 0x53e   : > { %v1406_v25 = vsel %vm1010_vm2, %v1400_v22, -inf }
 0x53f   : > { %1407 = vmax.xlane.f32.xlu1 %v1406_v25  ;;  %v1403_v26 = vsel %vm1010_vm2, %v1399_v24, -inf }
 0x540   : > { %1404 = vmax.xlane.f32.xlu0 %v1403_v26 }
 0x542   : > { %v3865_v27 = vpop.f32.mrb[10].mxu1 }
 0x543   : > { %v1390_v28 = vpop.f32.mrb[11].mxu1  ;;  %v1402_v30 = vmul.f32 0.17677669, %v3865_v27 }
 0x544   : > { %v1401_v29 = vmul.f32 0.17677669, %v1390_v28 }
 0x545   : > { %v1412_v32 = vsel %vm1010_vm2, %v1402_v30, -inf }
 0x546   : > { %v1409_v31 = vsel %vm1010_vm2, %v1401_v29, -inf }
 0x547   : > { %1410 = vmax.xlane.f32.xlu0 %v1409_v31 }
 0x54b   : > { %1413 = vmax.xlane.f32.xlu0 %v1412_v32 }
 0x5cc   : > { %v1408_v33 = vpop.xlane.xlu1 %1407 }
 0x5cd   : > { %v1416_v35 = vsub.f32 %v1400_v22, %v1408_v33  ;;  %v1405_v37 = vpop.xlane.xlu0 %1404 }
 0x5ce   : > { %v1415_v38 = vsub.f32 %v1399_v24, %v1405_v37 }
 0x5cf   : > { %v1421_v40 = vmul.f32 1.442695, %v1416_v35 }
 0x5d0   : > { %v1419_v41 = vmul.f32 1.442695, %v1415_v38 }
 0x5d1   : > { %4233 = vpow2.f32 %v1421_v40 }
 0x5d2   : > { %4235 = vpow2.f32 %v1419_v41 }
 0x5d4   : > { %v1411_v47 = vpop.xlane.xlu0 %1410 }
 0x5d5   : > { %v1417_v48 = vsub.f32 %v1401_v29, %v1411_v47 }
 0x5d7   : > { %v1423_v49 = vmul.f32 1.442695, %v1417_v48 }
 0x5d8   : > { %v1414_v50 = vpop.xlane.xlu0 %1413 }
 0x5d9   : > { %v1418_v51 = vsub.f32 %v1402_v30, %v1414_v50  ;;  %4237 = vpow2.f32 %v1423_v49 }
 0x5db   : > { %v4234_v42 = vpop.eup %4233  ;;  %v1425_v52 = vmul.f32 1.442695, %v1418_v51 }
 0x5dc   : > { %v4236_v43 = vpop.eup %4235  ;;  %v1430_v45 = vsel %vm1010_vm2, %v4234_v42, 0.0 }
 0x5dd   : > { %1431 = vadd.xlane.f32.xlu1 %v1430_v45  ;;  %v1427_v46 = vsel %vm1010_vm2, %v4236_v43, 0.0  ;;  %4239 = vpow2.f32 %v1425_v52 }
 0x5de   : > { %1428 = vadd.xlane.f32.xlu0 %v1427_v46 }
 0x5e3   : > { %v4238_v54 = vpop.eup %4237 }
 0x5e4   : > { %v1433_v55 = vsel %vm1010_vm2, %v4238_v54, 0.0 }
 0x5e7   : > { %v4240_v57 = vpop.eup %4239 }
 0x5e8   : > { %v1436_v59 = vsel %vm1010_vm2, %v4240_v57, 0.0 }
 0x5ee   : > { %4045 = vrot.lane.b32.xlu1 %v4513_v14, %s4334_s25 }
 0x5f2   : > { %4050 = vrot.lane.b32.xlu1 %v4542_v58, %s4335_s15 }
 0x5f4   : > { %4040 = vrot.lane.b32.xlu0 %v4517_v16, %s4334_s25 }
 0x5f6   : > { %4055 = vrot.lane.b32.xlu1 %v4556_v7, %s4335_s15 }
 0x613   : > { %1434 = vadd.xlane.f32.xlu0 %v1433_v55 }
 0x61a   : > { %1437 = vadd.xlane.f32.xlu1 %v1436_v59 }
 0x629   : > { %1625 = vrot.lane.b32.xlu0 %v4532_v53, %s4335_s15 }
 0x62b   : > { %1627 = vrot.lane.b32.xlu1 %v4554_v4, %s4335_s15 }
 0x62d   : > { %1716 = vrot.lane.b32.xlu0 %v4550_v1, %s4335_s15 }
 0x62f   : > { %1718 = vrot.lane.b32.xlu1 %v4567_v8, %s4335_s15 }
 0x66a   : > { %v1432_v60 = vpop.xlane.xlu1 %1431 }
 0x66b   : > { %4241 = vrcp.f32 %v1432_v60  ;;  %v1429_v61 = vpop.xlane.xlu0 %1428 }
 0x66c   : > { %4243 = vrcp.f32 %v1429_v61 }
 0x66e   : > { %v4046_v62 = vpop.permute.xlu1 %4045 }
 0x66f   : > { %v4048_v63 = vunpack.i.h.bf16 %v4046_v62  ;;  %v4047_v0 = vunpack.i.l.bf16 %v4046_v62  ;;  %v4041_v2 = vpop.permute.xlu0 %4040 }
 0x670   : > { %v4043_v3 = vunpack.i.h.bf16 %v4041_v2  ;;  %v4042_v6 = vunpack.i.l.bf16 %v4041_v2 }
 0x671   : > { %v3972_v5 = vpack.c.bf16 %v4048_v63, %v4047_v0 }
 0x672   : > { %v3968_v9 = vpack.c.bf16 %v4043_v3, %v4042_v6  ;;  %v4051_v10 = vpop.permute.xlu1 %4050 }
 0x673   : > { %v4053_v11 = vunpack.i.h.bf16 %v4051_v10  ;;  %v4052_v12 = vunpack.i.l.bf16 %v4051_v10  ;;  %3973 = vmatprep.subr.bf16.mxu1 %v3972_v5 }
 0x674   : > { %3969 = vmatprep.subr.bf16.mxu0 %v3968_v9  ;;  %3975 = vmatpush3.bf16.msra.mxu1 %v3972_v5 }
 0x675   : > { %v4242_v13 = vpop.eup %4241  ;;  %v3976_v17 = vpack.c.bf16 %v4053_v11, %v4052_v12  ;;  %3971 = vmatpush3.bf16.msra.mxu0 %v3968_v9 }
 0x676   : > { %v4244_v21 = vpop.eup %4243  ;;  %v4056_v22 = vpop.permute.xlu1 %4055  ;;  %v1444_v26 = vmul.f32 %v4242_v13, %v4234_v42 }
 0x677   : > { %v4058_v23 = vunpack.i.h.bf16 %v4056_v22  ;;  %v4057_v24 = vunpack.i.l.bf16 %v4056_v22  ;;  %3978 = vmatprep.subr.msk.bf16.mxu0 %vm4538_vm1, %v3976_v17  ;;  %v1443_v25 = vmul.f32 %v4244_v21, %v4236_v43 }
 0x679   : > { %v3982_v27 = vpack.c.bf16 %v4058_v23, %v4057_v24  ;;  %3870 = vmatprep.mubr.msk.f32.mxu0 %vm1010_vm2, %v1443_v25 }
 0x67a   : > { %3871 = vmatmul.mubr.msk.f32.vlgmr.msra.gmra.mrb[12].mxu0 %vm1010_vm2, %v1444_v26 }
 0x67b   : > { %3984 = vmatprep.subr.msk.bf16.mxu1 %vm4538_vm1, %v3982_v27 }
 0x67e   : > { %3981 = vmatpush3.bf16.xpose.msk.msra.mxu0 %vm4538_vm1, %v3976_v17 }
 0x6a0   : > { %v1435_v28 = vpop.xlane.xlu0 %1434 }
 0x6a1   : > { %4245 = vrcp.f32 %v1435_v28 }
 0x6a4   : > { %v1626_v29 = vpop.permute.xlu0 %1625 }
 0x6a5   : > { %3884 = vmatprep.mubr.msk.f32.mxu0 %vm831_vm0, %v1626_v29 }
 0x6a7   : > { %v1438_v30 = vpop.xlane.xlu1 %1437 }
 0x6a8   : > { %4247 = vrcp.f32 %v1438_v30  ;;  %v1717_v38 = vpop.permute.xlu0 %1716 }
 0x6ab   : > { %v4246_v31 = vpop.eup %4245  ;;  %v1628_v32 = vpop.permute.xlu1 %1627 }
 0x6ac   : > { %3885 = vmatmul.mubr.msk.f32.vlgmr.msra.gmra.mrb[14].mxu0 %vm831_vm0, %v1628_v32  ;;  %v1445_v33 = vmul.f32 %v4246_v31, %v4238_v54 }
 0x6ae   : > { %3877 = vmatprep.mubr.msk.f32.mxu1 %vm1010_vm2, %v1445_v33 }
 0x6af   : > { %v1719_v40 = vpop.permute.xlu1 %1718 }
 0x6b2   : > { %v4248_v35 = vpop.eup %4247 }
 0x6b3   : > { %v1446_v37 = vmul.f32 %v4248_v35, %v4240_v57 }
 0x6b5   : > { %3878 = vmatmul.mubr.msk.f32.vlgmr.msra.gmra.mrb[12].mxu1 %vm1010_vm2, %v1446_v37 }
 0x6b6   : > { %3987 = vmatpush3.bf16.xpose.msk.msra.mxu1 %vm4538_vm1, %v3982_v27  ;;  %3891 = vmatprep.mubr.msk.f32.mxu1 %vm831_vm0, %v1717_v38 }
 0x6bd   : > { %3892 = vmatmul.mubr.msk.f32.vlgmr.msra.gmra.mrb[14].mxu1 %vm831_vm0, %v1719_v40 }
 0x74d   : > { %v4656_v41 = vpop.f32.mrb[12].mxu0 }
 0x74e   : > { %v4658_v42 = vpop.f32.mrb[13].mxu0 }
 0x77f   : > { %v3886_v43 = vpop.f32.mrb[14].mxu0 }
 0x780   : > { %v1808_v45 = vmul.f32 0.17677669, %v3886_v43  ;;  %v1707_v46 = vpop.f32.mrb[15].mxu0 }
 0x781   : > { %v1807_v47 = vmul.f32 0.17677669, %v1707_v46 }
 0x782   : > { %v1814_v48 = vsel %vm1010_vm2, %v1808_v45, -inf }
 0x783   : > { %1815 = vmax.xlane.f32.xlu1 %v1814_v48  ;;  %v1811_v49 = vsel %vm1010_vm2, %v1807_v47, -inf }
 0x784   : > { %1812 = vmax.xlane.f32.xlu0 %v1811_v49 }
 0x788   : > { %v4662_v50 = vpop.f32.mrb[12].mxu1 }
 0x789   : > { %v4664_v51 = vpop.f32.mrb[13].mxu1 }
 0x790   : > { %v3893_v52 = vpop.f32.mrb[14].mxu1 }
 0x791   : > { %v1798_v54 = vpop.f32.mrb[15].mxu1  ;;  %v1810_v57 = vmul.f32 0.17677669, %v3893_v52 }
 0x792   : > { %v1809_v55 = vmul.f32 0.17677669, %v1798_v54 }
 0x793   : > { %v1820_v60 = vsel %vm1010_vm2, %v1810_v57, -inf }
 0x794   : > { %v1817_v59 = vsel %vm1010_vm2, %v1809_v55, -inf }
 0x795   : > { %1818 = vmax.xlane.f32.xlu0 %v1817_v59 }
 0x799   : > { %1821 = vmax.xlane.f32.xlu0 %v1820_v60 }
 0x810   : > { %v1816_v61 = vpop.xlane.xlu1 %1815 }
 0x811   : > { %v1824_v62 = vsub.f32 %v1808_v45, %v1816_v61  ;;  %v1813_v63 = vpop.xlane.xlu0 %1812 }
 0x812   : > { %v1823_v0 = vsub.f32 %v1807_v47, %v1813_v63 }
 0x813   : > { %v1829_v2 = vmul.f32 1.442695, %v1824_v62 }
 0x814   : > { %v1827_v3 = vmul.f32 1.442695, %v1823_v0 }
 0x815   : > { %4249 = vpow2.f32 %v1829_v2 }
 0x816   : > { %4251 = vpow2.f32 %v1827_v3 }
 0x81f   : > { %v4250_v6 = vpop.eup %4249 }
 0x820   : > { %v4252_v5 = vpop.eup %4251  ;;  %v1838_v9 = vsel %vm1010_vm2, %v4250_v6, 0.0 }
 0x821   : > { %1839 = vadd.xlane.f32.xlu1 %v1838_v9  ;;  %v1835_v10 = vsel %vm1010_vm2, %v4252_v5, 0.0 }
 0x822   : > { %1836 = vadd.xlane.f32.xlu0 %v1835_v10  ;;  %v1819_v11 = vpop.xlane.xlu0 %1818 }
 0x823   : > { %v1825_v12 = vsub.f32 %v1809_v55, %v1819_v11 }
 0x825   : > { %v1831_v13 = vmul.f32 1.442695, %v1825_v12 }
 0x826   : > { %v1822_v17 = vpop.xlane.xlu0 %1821 }
 0x827   : > { %v1826_v21 = vsub.f32 %v1810_v57, %v1822_v17  ;;  %4253 = vpow2.f32 %v1831_v13 }
 0x829   : > { %v1833_v22 = vmul.f32 1.442695, %v1826_v21 }
 0x82b   : > { %4255 = vpow2.f32 %v1833_v22 }
 0x831   : > { %v4254_v23 = vpop.eup %4253 }
 0x832   : > { %4065 = vrot.lane.b32.xlu1 %v4513_v14, %s4335_s15  ;;  %v1841_v24 = vsel %vm1010_vm2, %v4254_v23, 0.0 }
 0x835   : > { %v4256_v25 = vpop.eup %4255 }
 0x836   : > { %4070 = vrot.lane.b32.xlu1 %v4542_v58, %s4336_s23  ;;  %v1844_v58 = vsel %vm1010_vm2, %v4256_v25, 0.0 }
 0x838   : > { %4060 = vrot.lane.b32.xlu0 %v4517_v16, %s4335_s15 }
 0x83a   : > { %4075 = vrot.lane.b32.xlu1 %v4556_v7, %s4336_s23 }
 0x857   : > { %1842 = vadd.xlane.f32.xlu0 %v1841_v24 }
 0x85e   : > { %1845 = vadd.xlane.f32.xlu1 %v1844_v58 }
 0x86d   : > { %2029 = vrot.lane.b32.xlu0 %v4532_v53, %s4336_s23 }
 0x86f   : > { %2031 = vrot.lane.b32.xlu1 %v4554_v4, %s4336_s23 }
 0x871   : > { %2120 = vrot.lane.b32.xlu0 %v4550_v1, %s4336_s23 }
 0x873   : > { %2122 = vrot.lane.b32.xlu1 %v4567_v8, %s4336_s23 }
 0x8ae   : > { %v1840_v7 = vpop.xlane.xlu1 %1839 }
 0x8af   : > { %4257 = vrcp.f32 %v1840_v7  ;;  %v1837_v26 = vpop.xlane.xlu0 %1836 }
 0x8b0   : > { %4259 = vrcp.f32 %v1837_v26 }
 0x8b2   : > { %v4066_v27 = vpop.permute.xlu1 %4065 }
 0x8b3   : > { %v4068_v28 = vunpack.i.h.bf16 %v4066_v27  ;;  %v4067_v29 = vunpack.i.l.bf16 %v4066_v27  ;;  %v4061_v30 = vpop.permute.xlu0 %4060 }
 0x8b4   : > { %v4063_v31 = vunpack.i.h.bf16 %v4061_v30  ;;  %v4062_v32 = vunpack.i.l.bf16 %v4061_v30 }
 0x8b5   : > { %v3992_v53 = vpack.c.bf16 %v4068_v28, %v4067_v29 }
 0x8b6   : > { %v3988_v33 = vpack.c.bf16 %v4063_v31, %v4062_v32  ;;  %v4071_v35 = vpop.permute.xlu1 %4070 }
 0x8b7   : > { %v4073_v4 = vunpack.i.h.bf16 %v4071_v35  ;;  %v4072_v37 = vunpack.i.l.bf16 %v4071_v35  ;;  %3993 = vmatprep.subr.bf16.mxu1 %v3992_v53 }
 0x8b8   : > { %3989 = vmatprep.subr.bf16.mxu0 %v3988_v33  ;;  %3995 = vmatpush3.bf16.msra.mxu1 %v3992_v53 }
 0x8b9   : > { %v4258_v1 = vpop.eup %4257  ;;  %v3996_v8 = vpack.c.bf16 %v4073_v4, %v4072_v37  ;;  %3991 = vmatpush3.bf16.msra.mxu0 %v3988_v33 }
 0x8ba   : > { %v4260_v38 = vpop.eup %4259  ;;  %v4076_v40 = vpop.permute.xlu1 %4075  ;;  %v1852_v47 = vmul.f32 %v4258_v1, %v4250_v6 }
 0x8bb   : > { %v4078_v43 = vunpack.i.h.bf16 %v4076_v40  ;;  %v4077_v45 = vunpack.i.l.bf16 %v4076_v40  ;;  %3998 = vmatprep.subr.msk.bf16.mxu0 %vm4538_vm1, %v3996_v8  ;;  %v1851_v46 = vmul.f32 %v4260_v38, %v4252_v5 }
 0x8bd   : > { %v4002_v48 = vpack.c.bf16 %v4078_v43, %v4077_v45  ;;  %3898 = vmatprep.mubr.msk.f32.mxu0 %vm1010_vm2, %v1851_v46 }
 0x8be   : > { %3899 = vmatmul.mubr.msk.f32.vlgmr.msra.gmra.mrb[16].mxu0 %vm1010_vm2, %v1852_v47 }
 0x8bf   : > { %4004 = vmatprep.subr.msk.bf16.mxu1 %vm4538_vm1, %v4002_v48 }
 0x8c2   : > { %4001 = vmatpush3.bf16.xpose.msk.msra.mxu0 %vm4538_vm1, %v3996_v8 }
 0x8e4   : > { %v1843_v49 = vpop.xlane.xlu0 %1842 }
 0x8e5   : > { %4261 = vrcp.f32 %v1843_v49 }
 0x8e8   : > { %v2030_v52 = vpop.permute.xlu0 %2029 }
 0x8e9   : > { %3912 = vmatprep.mubr.msk.f32.mxu0 %vm831_vm0, %v2030_v52 }
 0x8eb   : > { %v1846_v54 = vpop.xlane.xlu1 %1845 }
 0x8ec   : > { %4263 = vrcp.f32 %v1846_v54  ;;  %v2121_v62 = vpop.permute.xlu0 %2120 }
 0x8ef   : > { %v4262_v55 = vpop.eup %4261  ;;  %v2032_v57 = vpop.permute.xlu1 %2031 }
 0x8f0   : > { %3913 = vmatmul.mubr.msk.f32.vlgmr.msra.gmra.mrb[18].mxu0 %vm831_vm0, %v2032_v57  ;;  %v1853_v59 = vmul.f32 %v4262_v55, %v4254_v23 }
 0x8f2   : > { %3905 = vmatprep.mubr.msk.f32.mxu1 %vm1010_vm2, %v1853_v59 }
 0x8f3   : > { %v2123_v63 = vpop.permute.xlu1 %2122 }
 0x8f6   : > { %v4264_v60 = vpop.eup %4263 }
 0x8f7   : > { %v1854_v61 = vmul.f32 %v4264_v60, %v4256_v25 }
 0x8f9   : > { %3906 = vmatmul.mubr.msk.f32.vlgmr.msra.gmra.mrb[16].mxu1 %vm1010_vm2, %v1854_v61 }
 0x8fa   : > { %4007 = vmatpush3.bf16.xpose.msk.msra.mxu1 %vm4538_vm1, %v4002_v48  ;;  %3919 = vmatprep.mubr.msk.f32.mxu1 %vm831_vm0, %v2121_v62 }
 0x901   : > { %3920 = vmatmul.mubr.msk.f32.vlgmr.msra.gmra.mrb[18].mxu1 %vm831_vm0, %v2123_v63 }
 0x991   : > { %v3900_v0 = vpop.f32.mrb[16].mxu0 }
 0x992   : > { %v1933_v2 = vpop.f32.mrb[17].mxu0 }
 0x9c3   : > { %v3914_v3 = vpop.f32.mrb[18].mxu0 }
 0x9c4   : > { %v2212_v6 = vmul.f32 0.17677669, %v3914_v3  ;;  %v2111_v5 = vpop.f32.mrb[19].mxu0 }
 0x9c5   : > { %v2211_v9 = vmul.f32 0.17677669, %v2111_v5 }
 0x9c6   : > { %v2218_v10 = vsel %vm1010_vm2, %v2212_v6, -inf }
 0x9c7   : > { %2219 = vmax.xlane.f32.xlu1 %v2218_v10  ;;  %v2215_v11 = vsel %vm1010_vm2, %v2211_v9, -inf  ;;  %v4121_v10 = vld [vmem:[%s4422_s12] ss:$16 sps:$4 sm:$0xff]  }
 0x9c8   : > { %2216 = vmax.xlane.f32.xlu0 %v2215_v11  ;;  %v4123_v11 = vld [vmem:[%s4422_s12 + $0x4] ss:$16 sps:$4 sm:$0xff]  }
 0x9cc   : > { %v4706_v12 = vpop.f32.mrb[16].mxu1 }
 0x9cd   : > { %v4708_v56 = vpop.f32.mrb[17].mxu1 }
 0x9d4   : > { %v3921_v13 = vpop.f32.mrb[18].mxu1 }
 0x9d5   : > { %v2202_v17 = vpop.f32.mrb[19].mxu1  ;;  %v2214_v22 = vmul.f32 0.17677669, %v3921_v13  ;;  %v4124_v13 = vld [vmem:[%s4422_s12 + $0x8] ss:$16 sps:$4 sm:$0xff]  }
 0x9d6   : > { %v2213_v21 = vmul.f32 0.17677669, %v2202_v17  ;;  %v4126_v17 = vld [vmem:[%s4422_s12 + $0xc] ss:$16 sps:$4 sm:$0xff]  }
 0x9d7   : > { %v2224_v24 = vsel %vm1010_vm2, %v2214_v22, -inf }
 0x9d8   : > { %v2221_v23 = vsel %vm1010_vm2, %v2213_v21, -inf }
 0x9d9   : > { %2222 = vmax.xlane.f32.xlu0 %v2221_v23  ;;  %v4133_v23 = vld [vmem:[%s4422_s12 + $0x40] ss:$16 sps:$4 sm:$0xff]  }
 0x9dd   : > { %2225 = vmax.xlane.f32.xlu0 %v2224_v24  ;;  %v4136_v24 = vld [vmem:[%s4422_s12 + $0x48] ss:$16 sps:$4 sm:$0xff]  }
 0xa54   : > { %v2220_v25 = vpop.xlane.xlu1 %2219 }
 0xa55   : > { %v2228_v58 = vsub.f32 %v2212_v6, %v2220_v25  ;;  %v2217_v7 = vpop.xlane.xlu0 %2216 }
 0xa56   : > { %v2227_v26 = vsub.f32 %v2211_v9, %v2217_v7 }
 0xa57   : > { %v2233_v27 = vmul.f32 1.442695, %v2228_v58 }
 0xa58   : > { %v2231_v28 = vmul.f32 1.442695, %v2227_v26 }
 0xa59   : > { %4265 = vpow2.f32 %v2233_v27 }
 0xa5a   : > { %4267 = vpow2.f32 %v2231_v28 }
 0xa63   : > { %v4266_v29 = vpop.eup %4265 }
 0xa64   : > { %v4268_v30 = vpop.eup %4267  ;;  %v2242_v31 = vsel %vm1010_vm2, %v4266_v29, 0.0 }
 0xa65   : > { %2243 = vadd.xlane.f32.xlu1 %v2242_v31  ;;  %v2239_v32 = vsel %vm1010_vm2, %v4268_v30, 0.0 }
 0xa66   : > { %v2223_v53 = vpop.xlane.xlu0 %2222  ;;  %2240 = vadd.xlane.f32.xlu0 %v2239_v32 }
 0xa67   : > { %v2229_v33 = vsub.f32 %v2213_v21, %v2223_v53  ;;  %v4132_v21 = vld [vmem:[%s4422_s12 + $0x2c] ss:$16 sps:$4 sm:$0xff]  }
 0xa69   : > { %v2235_v35 = vmul.f32 1.442695, %v2229_v33  ;;  %v4321_v33 = vld [vmem:[#allocation2 + $0x8] sm:$0xff] }
 0xa6a   : > { %v2226_v4 = vpop.xlane.xlu0 %2225 }
 0xa6b   : > { %4269 = vpow2.f32 %v2235_v35  ;;  %v2230_v37 = vsub.f32 %v2214_v22, %v2226_v4  ;;  %v4138_v22 = vld [vmem:[%s4422_s12 + $0x4c] ss:$16 sps:$4 sm:$0xff]  }
 0xa6d   : > { %v2237_v1 = vmul.f32 1.442695, %v2230_v37  ;;  %v4322_v37 = vld [vmem:[#allocation2] sm:$0xff] }
 0xa6f   : > { %4271 = vpow2.f32 %v2237_v1 }
 0xa75   : > { %v4270_v8 = vpop.eup %4269 }
 0xa76   : > { %v2245_v38 = vsel %vm1010_vm2, %v4270_v8, 0.0 }
 0xa77   : > { %2246 = vadd.xlane.f32.xlu0 %v2245_v38 }
 0xa79   : > { %v4272_v40 = vpop.eup %4271 }
 0xa7a   : > { %v2248_v43 = vsel %vm1010_vm2, %v4272_v40, 0.0 }
 0xa7b   : > { %2249 = vadd.xlane.f32.xlu1 %v2248_v43 }
 0xa8c   : > { %4085 = vrot.lane.b32.xlu1 %v4513_v14, %s4336_s23 }
 0xa8d   : > { %4080 = vrot.lane.b32.xlu0 %v4517_v16, %s4336_s23 }
 0xa90   : > { %2437 = vrot.lane.b32.xlu1 %v4658_v42, %s4336_s23 }
 0xa91   : > { %2453 = vrot.lane.b32.xlu0 %v1933_v2, %s4335_s15 }
 0xa94   : > { %2439 = vrot.lane.b32.xlu1 %v4656_v41, %s4336_s23 }
 0xa98   : > { %2455 = vrot.lane.b32.xlu1 %v3900_v0, %s4335_s15 }
 0xaf2   : > { %v2244_v47 = vpop.xlane.xlu1 %2243 }
 0xaf3   : > { %v2241_v45 = vpop.xlane.xlu0 %2240 }
 0xaf4   : > { %4273 = vrcp.f32 %v2241_v45 }
 0xaf5   : > { %4275 = vrcp.f32 %v2244_v47 }
 0xafe   : > { %v4274_v46 = vpop.eup %4273 }
 0xaff   : > { %v2255_v48 = vmul.f32 %v4274_v46, %v4268_v30  ;;  %v4276_v55 = vpop.eup %4275 }
 0xb00   : > { %v2256_v61 = vmul.f32 %v4276_v55, %v4266_v29 }
 0xb01   : > { %3926 = vmatprep.mubr.msk.f32.mxu0 %vm1010_vm2, %v2255_v48 }
 0xb04   : > { %v2247_v14 = vpop.xlane.xlu0 %2246 }
 0xb05   : > { %4277 = vrcp.f32 %v2247_v14 }
 0xb08   : > { %v2250_v16 = vpop.xlane.xlu1 %2249  ;;  %v4081_v49 = vpop.permute.xlu0 %4080 }
 0xb09   : > { %4279 = vrcp.f32 %v2250_v16  ;;  %v4083_v42 = vunpack.i.h.bf16 %v4081_v49  ;;  %v4082_v52 = vunpack.i.l.bf16 %v4081_v49 }
 0xb0b   : > { %v4008_v54 = vpack.c.bf16 %v4083_v42, %v4082_v52  ;;  %v4323_v52 = vld [vmem:[#allocation2 + $0x10] sm:$0xff] }
 0xb0c   : > { %v4086_v41 = vpop.permute.xlu1 %4085  ;;  %v2454_v26 = vpop.permute.xlu0 %2453 }
 0xb0d   : > { %v4088_v57 = vunpack.i.h.bf16 %v4086_v41  ;;  %v4087_v59 = vunpack.i.l.bf16 %v4086_v41  ;;  %4009 = vmatprep.subr.bf16.mxu0 %v4008_v54  ;;  %v4141_v41 = vld [vmem:[%s4422_s12 + $0x64] ss:$16 sps:$4 sm:$0xff]  }
 0xb0e   : > { %4011 = vmatpush3.bf16.msra.mxu0 %v4008_v54 }
 0xb0f   : > { %v4278_v60 = vpop.eup %4277  ;;  %v4012_v62 = vpack.c.bf16 %v4088_v57, %v4087_v59  ;;  %2754 = vmatprep.subr.bf16.mxu0 %v4123_v11  ;;  %v4144_v57 = vld [vmem:[%s4422_s12 + $0x6c] ss:$16 sps:$4 sm:$0xff]  }
 0xb10   : > { %v2257_v63 = vmul.f32 %v4278_v60, %v4270_v8  ;;  %v2438_v25 = vpop.permute.xlu1 %2437  ;;  %v4139_v60 = vld [vmem:[%s4422_s12 + $0x60] ss:$16 sps:$4 sm:$0xff]   ;;  %v4162_v11 = vld [vmem:[%s4422_s12 + $0xcc] ss:$16 sps:$4 sm:$0xff]  }
 0xb11   : > { %3927 = vmatmul.mubr.msk.f32.vlgmr.msra.gmra.mrb[20].mxu0 %vm1010_vm2, %v2256_v61  ;;  %4013 = vmatprep.subr.bf16.mxu1 %v4012_v62  ;;  %v2481_v27 = vsel %vm831_vm0, %v4610_v15, %v2438_v25  ;;  %v4142_v61 = vld [vmem:[%s4422_s12 + $0x68] ss:$16 sps:$4 sm:$0xff]  }
 0xb12   : > { %4015 = vmatpush3.bf16.msra.mxu1 %v4012_v62  ;;  %3933 = vmatprep.mubr.msk.f32.mxu1 %vm1010_vm2, %v2257_v63  ;;  %v2486_v32 = vsel %vm2485_vm3, %v2481_v27, %v2454_v26  ;;  %v4147_v62 = vld [vmem:[%s4422_s12 + $0x84] ss:$16 sps:$4 sm:$0xff]   ;;  %v4150_v63 = vld [vmem:[%s4422_s12 + $0x8c] ss:$16 sps:$4 sm:$0xff]  }
 0xb13   : > { %v4280_v0 = vpop.eup %4279  ;;  %2786 = vmatprep.mubr.bf16.mxu0 %v4333_v34  ;;  %2807 = vmatprep.subr.bf16.mxu1 %v4126_v17  ;;  %v4160_v17 = vld [vmem:[%s4422_s12 + $0xc8] ss:$16 sps:$4 sm:$0xff]  }
 0xb14   : > { %v2258_v2 = vmul.f32 %v4280_v0, %v4272_v40  ;;  %2755 = vmatpush1.bf16.msra.mxu0 %v4121_v10  ;;  %v2440_v58 = vpop.permute.xlu1 %2439  ;;  %v4145_v0 = vld [vmem:[%s4422_s12 + $0x80] ss:$16 sps:$4 sm:$0xff]   ;;  %v4159_v10 = vld [vmem:[%s4422_s12 + $0xc4] ss:$16 sps:$4 sm:$0xff]  }
 0xb15   : > { %v2482_v28 = vsel %vm831_vm0, %v4608_v18, %v2440_v58 }
 0xb16   : > { %3934 = vmatmul.mubr.msk.f32.vlgmr.msra.gmra.mrb[20].mxu1 %vm1010_vm2, %v2258_v2  ;;  %v4148_v2 = vld [vmem:[%s4422_s12 + $0x88] ss:$16 sps:$4 sm:$0xff]  }
 0xb17   : > { %2839 = vmatprep.mubr.bf16.mxu1 %v4333_v34  ;;  %2808 = vmatpush1.bf16.msra.mxu1 %v4124_v13  ;;  %v4157_v13 = vld [vmem:[%s4422_s12 + $0xc0] ss:$16 sps:$4 sm:$0xff]  }
 0xb18   : > { %2809 = vmatprep.subr.bf16.mxu1 %v4132_v21  ;;  %v2456_v7 = vpop.permute.xlu1 %2455  ;;  %v4168_v21 = vld [vmem:[%s4422_s12 + $0xec] ss:$16 sps:$4 sm:$0xff]  }
 0xb19   : > { %v2487_v29 = vsel %vm2485_vm3, %v2482_v28, %v2456_v7 }
 0xbe4   : > { %v3928_v3 = vpop.f32.mrb[20].mxu0 }
 0xbe5   : > { %2471 = vrot.lane.b32.xlu1 %v3928_v3, %s4334_s25  ;;  %v2337_v6 = vpop.f32.mrb[21].mxu0  ;;  %v4153_v3 = vld [vmem:[%s4422_s12 + $0xa4] ss:$16 sps:$4 sm:$0xff]  }
 0xbe6   : > { %2469 = vrot.lane.b32.xlu0 %v2337_v6, %s4334_s25  ;;  %v4156_v6 = vld [vmem:[%s4422_s12 + $0xac] ss:$16 sps:$4 sm:$0xff]  }
 0xbe9   : > { %v3935_v5 = vpop.f32.mrb[20].mxu1  ;;  %2443 = vrot.lane.b32.xlu1 %v4662_v50, %s4336_s23  ;;  %v4129_v50 = vld [vmem:[%s4422_s12 + $0x24] ss:$16 sps:$4 sm:$0xff]  }
 0xbea   : > { %v2424_v9 = vpop.f32.mrb[21].mxu1  ;;  %2441 = vrot.lane.b32.xlu0 %v4664_v51, %s4336_s23  ;;  %v4127_v51 = vld [vmem:[%s4422_s12 + $0x20] ss:$16 sps:$4 sm:$0xff]   ;;  %2756 = vmatprep.subr.bf16.mxu0 %v4129_v50  ;;  %v4165_v50 = vld [vmem:[%s4422_s12 + $0xe4] ss:$16 sps:$4 sm:$0xff]  }
 0xbeb   : > { %2757 = vmatpush1.bf16.msra.mxu0 %v4127_v51  ;;  %v4163_v51 = vld [vmem:[%s4422_s12 + $0xe0] ss:$16 sps:$4 sm:$0xff]  }
 0xbed   : > { %2459 = vrot.lane.b32.xlu1 %v4706_v12, %s4335_s15  ;;  %v4130_v12 = vld [vmem:[%s4422_s12 + $0x28] ss:$16 sps:$4 sm:$0xff]  }
 0xbee   : > { %2457 = vrot.lane.b32.xlu0 %v4708_v56, %s4335_s15  ;;  %v4135_v56 = vld [vmem:[%s4422_s12 + $0x44] ss:$16 sps:$4 sm:$0xff]   ;;  %2810 = vmatpush1.bf16.msra.mxu1 %v4130_v12  ;;  %v4166_v12 = vld [vmem:[%s4422_s12 + $0xe8] ss:$16 sps:$4 sm:$0xff]  }
 0xbef   : > { %2758 = vmatprep.subr.bf16.mxu0 %v4135_v56  ;;  %2811 = vmatprep.subr.bf16.mxu1 %v4138_v22 }
 0xbf0   : > { %2759 = vmatpush1.bf16.msra.mxu0 %v4133_v23 }
 0xbf1   : > { %2475 = vrot.lane.b32.xlu1 %v3935_v5, %s4334_s25  ;;  %2760 = vmatprep.subr.bf16.mxu0 %v4141_v41  ;;  %v4151_v5 = vld [vmem:[%s4422_s12 + $0xa0] ss:$16 sps:$4 sm:$0xff]  }
 0xbf2   : > { %2473 = vrot.lane.b32.xlu0 %v2424_v9, %s4334_s25  ;;  %2812 = vmatpush1.bf16.msra.mxu1 %v4136_v24  ;;  %v4154_v9 = vld [vmem:[%s4422_s12 + $0xa8] ss:$16 sps:$4 sm:$0xff]   ;;  %s5014_s12 = scalar_lea.vmem %s5003_s4, %s4395_s11  ;;  %v4178_v41 = vld [vmem:[%s4432_s21 + $0xd0] sm:$0xff]  }
 0xbf3   : > { %2813 = vmatprep.subr.bf16.mxu1 %v4144_v57  ;;  %v3603_v28 = vld [vmem:[%s5014_s12] ss:$0 sm:$0xff]  ;;  %v4179_v57 = vld [vmem:[%s4432_s21 + $0x10] sm:$0xff]  }
 0xbf4   : > { %2761 = vmatpush1.bf16.msra.mxu0 %v4139_v60  ;;  %v4181_v60 = vld [vmem:[%s4432_s21 + $0x58] sm:$0xff]  }
 0xbf5   : > { %2762 = vmatprep.subr.bf16.mxu0 %v4147_v62  ;;  %v4183_v62 = vld [vmem:[%s4432_s21 + $0x18] sm:$0xff]  }
 0xbf6   : > { %2814 = vmatpush1.bf16.msra.mxu1 %v4142_v61  ;;  %v4182_v61 = vld [vmem:[%s4432_s21 + $0xd8] sm:$0xff]  }
 0xbf7   : > { %2815 = vmatprep.subr.bf16.mxu1 %v4150_v63  ;;  %v4184_v63 = vld [vmem:[%s4432_s21 + $0x98] sm:$0xff]  }
 0xbf8   : > { %2763 = vmatpush1.bf16.msra.mxu0 %v4145_v0  ;;  %v4185_v0 = vld [vmem:[%s4432_s21 + $0x60] sm:$0xff]  }
 0xbf9   : > { %2764 = vmatprep.subr.bf16.mxu0 %v4153_v3  ;;  %v4187_v3 = vld [vmem:[%s4432_s21 + $0x20] sm:$0xff]  }
 0xbfa   : > { %2816 = vmatpush1.bf16.msra.mxu1 %v4148_v2  ;;  %v4186_v2 = vld [vmem:[%s4432_s21 + $0xe0] sm:$0xff]  }
 0xbfb   : > { %2817 = vmatprep.subr.bf16.mxu1 %v4156_v6  ;;  %v4188_v6 = vld [vmem:[%s4432_s21 + $0xa0] sm:$0xff]  }
 0xbfc   : > { %2765 = vmatpush1.bf16.msra.mxu0 %v4151_v5  ;;  %v4189_v5 = vld [vmem:[%s4432_s21 + $0x68] sm:$0xff]  }
 0xbfd   : > { %2766 = vmatprep.subr.bf16.mxu0 %v4159_v10  ;;  %v4191_v10 = vld [vmem:[%s4432_s21 + $0x28] sm:$0xff]  }
 0xbfe   : > { %2818 = vmatpush1.bf16.msra.mxu1 %v4154_v9  ;;  %v4190_v9 = vld [vmem:[%s4432_s21 + $0xe8] sm:$0xff]  }
 0xbff   : > { %2819 = vmatprep.subr.bf16.mxu1 %v4162_v11  ;;  %v4192_v11 = vld [vmem:[%s4432_s21 + $0xa8] sm:$0xff]  }
 0xc00   : > { %2767 = vmatpush1.bf16.msra.mxu0 %v4157_v13  ;;  %v4193_v13 = vld [vmem:[%s4432_s21 + $0x70] sm:$0xff]  }
 0xc01   : > { %2768 = vmatprep.subr.bf16.mxu0 %v4165_v50  ;;  %v4195_v50 = vld [vmem:[%s4432_s21 + $0x30] sm:$0xff]  }
 0xc02   : > { %2820 = vmatpush1.bf16.msra.mxu1 %v4160_v17  ;;  %v4194_v17 = vld [vmem:[%s4432_s21 + $0xf0] sm:$0xff]  }
 0xc03   : > { %2821 = vmatprep.subr.bf16.mxu1 %v4168_v21  ;;  %v4196_v21 = vld [vmem:[%s4432_s21 + $0xb0] sm:$0xff]  }
 0xc04   : > { %2769 = vmatpush1.bf16.msra.mxu0 %v4163_v51  ;;  %v4197_v51 = vld [vmem:[%s4432_s21 + $0x78] sm:$0xff]  }
 0xc06   : > { %2822 = vmatpush1.bf16.msra.mxu1 %v4166_v12  ;;  %v4198_v12 = vld [vmem:[%s4432_s21 + $0xf8] sm:$0xff]  }
 0xc57   : > { %v2472_v30 = vpop.permute.xlu1 %2471 }
 0xc58   : > { %v2492_v31 = vsel %vm2490_vm4, %v2487_v29, %v2472_v30  ;;  %v2470_v53 = vpop.permute.xlu0 %2469 }
 0xc59   : > { %v4763_v35 = vadd.f32 %v4321_v33, %v2492_v31  ;;  %v2491_v4 = vsel %vm2490_vm4, %v2486_v32, %v2470_v53 }
 0xc5a   : > { %v4766_v15 = vadd.f32 %v4322_v37, %v2491_v4 }
 0xc5b   : > { %v2444_v1 = vpop.permute.xlu1 %2443  ;;  %v2501_v18 = vmul.f32 %v4763_v35, %v4763_v35 }
 0xc5c   : > { %v2442_v8 = vpop.permute.xlu0 %2441  ;;  %v2500_v38 = vmul.f32 %v4766_v15, %v4766_v15  ;;  %v2484_v45 = vsel %vm831_vm0, %v4612_v19, %v2444_v1  ;;  %v4324_v19 = vld [vmem:[#allocation2 + $0x18] sm:$0xff] }
 0xc5d   : > { %2506 = vadd.xlane.f32.xlu1 %v2501_v18  ;;  %v2483_v46 = vsel %vm831_vm0, %v4614_v20, %v2442_v8 }
 0xc5e   : > { %2504 = vadd.xlane.f32.xlu0 %v2500_v38 }
 0xc5f   : > { %v2460_v40 = vpop.permute.xlu1 %2459 }
 0xc60   : > { %v2458_v43 = vpop.permute.xlu0 %2457  ;;  %v2489_v48 = vsel %vm2485_vm3, %v2484_v45, %v2460_v40 }
 0xc61   : > { %v2488_v14 = vsel %vm2485_vm3, %v2483_v46, %v2458_v43 }
 0xc63   : > { %v2476_v47 = vpop.permute.xlu1 %2475 }
 0xc64   : > { %v2474_v16 = vpop.permute.xlu0 %2473  ;;  %v2494_v49 = vsel %vm2490_vm4, %v2489_v48, %v2476_v47  ;;  %v4169_v48 = vld [vmem:[%s4432_s21 + $0x40] sm:$0xff]  }
 0xc65   : > { %v2493_v42 = vsel %vm2490_vm4, %v2488_v14, %v2474_v16  ;;  %v4782_v20 = vadd.f32 %v4324_v19, %v2494_v49  ;;  %v4170_v14 = vld [vmem:[%s4432_s21 + $0xc0] sm:$0xff]   ;;  %3748 = vmatprep.subr.bf16.mxu0 %v4169_v48  ;;  %v4173_v49 = vld [vmem:[%s4432_s21 + $0x48] sm:$0xff]  }
 0xc66   : > { %v4780_v54 = vadd.f32 %v4323_v52, %v2493_v42  ;;  %3776 = vmatprep.subr.bf16.mxu1 %v4170_v14  ;;  %v4172_v16 = vld [vmem:[%s4432_s21 + $0x80] sm:$0xff]   ;;  %v4174_v42 = vld [vmem:[%s4432_s21 + $0xc8] sm:$0xff]  }
 0xc67   : > { %v2503_v59 = vmul.f32 %v4782_v20, %v4782_v20  ;;  %v4175_v52 = vld [vmem:[%s4432_s21 + $0x8] sm:$0xff]  }
 0xc68   : > { %v2502_v55 = vmul.f32 %v4780_v54, %v4780_v54  ;;  %v4176_v19 = vld [vmem:[%s4432_s21 + $0x88] sm:$0xff]  }
 0xc6a   : > { %2508 = vadd.xlane.f32.xlu0 %v2502_v55  ;;  %v4177_v55 = vld [vmem:[%s4432_s21 + $0x50] sm:$0xff]  }
 0xc6e   : > { %2510 = vadd.xlane.f32.xlu0 %v2503_v59  ;;  %v4180_v59 = vld [vmem:[%s4432_s21 + $0x90] sm:$0xff]  }
 0xcea   : > { %v2507_v56 = vpop.xlane.xlu1 %2506 }
 0xceb   : > { %v2513_v22 = vmul.f32 0.0078125, %v2507_v56  ;;  %v2505_v23 = vpop.xlane.xlu0 %2504  ;;  %v4199_v56 = vld [vmem:[%s4432_s21 + $0x38] sm:$0xff]  }
 0xcec   : > { %v2512_v24 = vmul.f32 0.0078125, %v2505_v23  ;;  %v2584_v23 = vsub.s32 2, %v4523_v36 }
 0xced   : > { %v2517_v25 = vadd.f32 1e-06, %v2513_v22  ;;  %v4200_v22 = vld [vmem:[%s4432_s21 + $0xb8] sm:$0xff]  }
 0xcee   : > { %v2516_v58 = vadd.f32 1e-06, %v2512_v24  ;;  %v2572_v24 = vld [vmem:[%s4427_s18] sm:$0xf] }
 0xcef   : > { %4281 = vrsqrt.f32 %v2517_v25  ;;  %v2588_v25 = vsub.s32 3, %v4523_v36 }
 0xcf0   : > { %4283 = vrsqrt.f32 %v2516_v58  ;;  %v4856_v58 = vrot.slane %v2572_v24, %v815_v39 }
 0xcf7   : > { %v2509_v7 = vpop.xlane.xlu0 %2508 }
 0xcf8   : > { %v2514_v26 = vmul.f32 0.0078125, %v2509_v7  ;;  %v4858_v7 = vrot.slane %v2572_v24, %v2584_v23 }
 0xcf9   : > { %v4282_v27 = vpop.eup %4281 }
 0xcfa   : > { %v4284_v29 = vpop.eup %4283  ;;  %v2518_v30 = vadd.f32 1e-06, %v2514_v26  ;;  %v2525_v31 = vmul.f32 %v4282_v27, %v4763_v35  ;;  %v4862_v26 = vrot.slane %v2572_v24, %v819_v44  ;;  %v4864_v27 = vrot.slane %v2572_v24, %v2588_v25 }
 0xcfb   : > { %v2511_v32 = vpop.xlane.xlu0 %2510  ;;  %v2524_v53 = vmul.f32 %v4284_v29, %v4766_v15 }
 0xcfc   : > { %4285 = vrsqrt.f32 %v2518_v30  ;;  %v2515_v33 = vmul.f32 0.0078125, %v2511_v32  ;;  %v2535_v4 = vmul.f32 %v3603_v28, %v2525_v31 }
 0xcfd   : > { %v2534_v37 = vmul.f32 %v3603_v28, %v2524_v53 }
 0xcfe   : > { %v2519_v1 = vadd.f32 1e-06, %v2515_v33 }
 0xcff   : > { %v2538_v18 = vpack.c.bf16 %v2535_v4, %v2534_v37 }
 0xd00   : > { %4287 = vrsqrt.f32 %v2519_v1 }
 0xd01   : > { %2787 = vmatmul.mubr.bf16.vlgmr.msra.gmra.mrb[24].mxu0 %v2538_v18  ;;  %2840 = vmatmul.mubr.bf16.vlgmr.msra.gmra.mrb[24].mxu1 %v2538_v18 }
 0xd02   : > { %2796 = vmatprep.mubr.bf16.mxu0 %v4333_v34  ;;  %2849 = vmatprep.mubr.bf16.mxu1 %v4333_v34  ;;  %v4171_v34 = vld [vmem:[%s4432_s21] sm:$0xff]  }
 0xd03   : > { %3749 = vmatpush3.bf16.msra.mxu0 %v4171_v34  ;;  %3777 = vmatpush3.bf16.msra.mxu1 %v4172_v16 }
 0xd04   : > { %3750 = vmatprep.subr.bf16.mxu0 %v4173_v49  ;;  %3778 = vmatprep.subr.bf16.mxu1 %v4174_v42 }
 0xd06   : > { %v4286_v8 = vpop.eup %4285 }
 0xd07   : > { %v2526_v38 = vmul.f32 %v4286_v8, %v4780_v54  ;;  %3751 = vmatpush3.bf16.msra.mxu0 %v4175_v52  ;;  %3779 = vmatpush3.bf16.msra.mxu1 %v4176_v19 }
 0xd08   : > { %3752 = vmatprep.subr.bf16.mxu0 %v4177_v55  ;;  %3780 = vmatprep.subr.bf16.mxu1 %v4178_v41 }
 0xd09   : > { %v2536_v45 = vmul.f32 %v3603_v28, %v2526_v38 }
 0xd0a   : > { %v4288_v40 = vpop.eup %4287 }
 0xd0b   : > { %v2527_v43 = vmul.f32 %v4288_v40, %v4782_v20  ;;  %3753 = vmatpush3.bf16.msra.mxu0 %v4179_v57  ;;  %3781 = vmatpush3.bf16.msra.mxu1 %v4180_v59 }
 0xd0c   : > { %3754 = vmatprep.subr.bf16.mxu0 %v4181_v60  ;;  %3782 = vmatprep.subr.bf16.mxu1 %v4182_v61 }
 0xd0d   : > { %v2537_v46 = vmul.f32 %v3603_v28, %v2527_v43 }
 0xd0f   : > { %v2539_v47 = vpack.c.bf16 %v2537_v46, %v2536_v45  ;;  %3755 = vmatpush3.bf16.msra.mxu0 %v4183_v62  ;;  %3783 = vmatpush3.bf16.msra.mxu1 %v4184_v63 }
 0xd10   : > { %3756 = vmatprep.subr.bf16.mxu0 %v4185_v0  ;;  %3784 = vmatprep.subr.bf16.mxu1 %v4186_v2 }
 0xd11   : > { %2797 = vmatmul.mubr.bf16.gmra.mrb[28].mxu0 %v2539_v47  ;;  %2850 = vmatmul.mubr.bf16.gmra.mrb[28].mxu1 %v2539_v47 }
 0xd13   : > { %3757 = vmatpush3.bf16.msra.mxu0 %v4187_v3  ;;  %3785 = vmatpush3.bf16.msra.mxu1 %v4188_v6 }
 0xd14   : > { %3758 = vmatprep.subr.bf16.mxu0 %v4189_v5  ;;  %3786 = vmatprep.subr.bf16.mxu1 %v4190_v9 }
 0xd17   : > { %3759 = vmatpush3.bf16.msra.mxu0 %v4191_v10  ;;  %3787 = vmatpush3.bf16.msra.mxu1 %v4192_v11 }
 0xd18   : > { %3760 = vmatprep.subr.bf16.mxu0 %v4193_v13  ;;  %3788 = vmatprep.subr.bf16.mxu1 %v4194_v17 }
 0xd1b   : > { %3761 = vmatpush3.bf16.msra.mxu0 %v4195_v50  ;;  %3789 = vmatpush3.bf16.msra.mxu1 %v4196_v21 }
 0xd1c   : > { %3762 = vmatprep.subr.bf16.mxu0 %v4197_v51  ;;  %3790 = vmatprep.subr.bf16.mxu1 %v4198_v12 }
 0xd1f   : > { %3763 = vmatpush3.bf16.msra.mxu0 %v4199_v56  ;;  %3791 = vmatpush3.bf16.msra.mxu1 %v4200_v22 }
 0xdd4   : > { %v2788_v28 = vpop.f32.mrb[24].mxu0  ;;  %v2841_v29 = vpop.f32.mrb[24].mxu1 }
 0xdd5   : > { %v2789_v30 = vadd.f32 %v2788_v28, %v4856_v58  ;;  %v2842_v31 = vadd.f32 %v2841_v29, %v4858_v7  ;;  %v2790_v32 = vpop.f32.mrb[25].mxu0  ;;  %v2843_v53 = vpop.f32.mrb[25].mxu1 }
 0xdd6   : > { %v4869_v33 = vadd.f32 %v2790_v32, %v4862_v26  ;;  %v4872_v39 = vadd.f32 %v2843_v53, %v4864_v27  ;;  %v2792_v4 = vpop.f32.mrb[26].mxu0  ;;  %v2845_v36 = vpop.f32.mrb[26].mxu1 }
 0xdd7   : > { %v2876_v44 = vmul.f32 0.044715, %v2789_v30  ;;  %v2878_v37 = vmul.f32 0.044715, %v2842_v31  ;;  %v4877_v8 = vadd.f32 %v2792_v4, %v4856_v58  ;;  %v4880_v38 = vadd.f32 %v2845_v36, %v4858_v7  ;;  %v2794_v40 = vpop.f32.mrb[27].mxu0  ;;  %v2847_v43 = vpop.f32.mrb[27].mxu1 }
 0xdd8   : > { %v2877_v1 = vmul.f32 0.044715, %v4869_v33  ;;  %v2879_v18 = vmul.f32 0.044715, %v4872_v39  ;;  %v4883_v47 = vadd.f32 %v2794_v40, %v4862_v26  ;;  %v4886_v48 = vadd.f32 %v2847_v43, %v4864_v27 }
 0xdd9   : > { %v2892_v45 = vmul.f32 %v2876_v44, %v2789_v30  ;;  %v2894_v46 = vmul.f32 %v2878_v37, %v2842_v31  ;;  %v2880_v34 = vmul.f32 0.044715, %v4877_v8  ;;  %v2882_v42 = vmul.f32 0.044715, %v4880_v38 }
 0xdda   : > { %v2893_v14 = vmul.f32 %v2877_v1, %v4869_v33  ;;  %v2895_v19 = vmul.f32 %v2879_v18, %v4872_v39  ;;  %v2881_v41 = vmul.f32 0.044715, %v4883_v47  ;;  %v2883_v61 = vmul.f32 0.044715, %v4886_v48 }
 0xddb   : > { %v2908_v16 = vmul.f32 %v2892_v45, %v2789_v30  ;;  %v2910_v49 = vmul.f32 %v2894_v46, %v2842_v31  ;;  %v2896_v55 = vmul.f32 %v2880_v34, %v4877_v8  ;;  %v2898_v60 = vmul.f32 %v2882_v42, %v4880_v38 }
 0xddc   : > { %v2909_v52 = vmul.f32 %v2893_v14, %v4869_v33  ;;  %v2897_v63 = vmul.f32 %v2881_v41, %v4883_v47  ;;  %v2899_v6 = vmul.f32 %v2883_v61, %v4886_v48  ;;  %v2911_v11 = vmul.f32 %v2895_v19, %v4872_v39 }
 0xddd   : > { %v2924_v57 = vadd.f32 %v2908_v16, %v2789_v30  ;;  %v2926_v59 = vadd.f32 %v2910_v49, %v2842_v31  ;;  %v2912_v62 = vmul.f32 %v2896_v55, %v4877_v8  ;;  %v2914_v3 = vmul.f32 %v2898_v60, %v4880_v38 }
 0xdde   : > { %v2913_v9 = vmul.f32 %v2897_v63, %v4883_v47  ;;  %v2925_v10 = vadd.f32 %v2909_v52, %v4869_v33  ;;  %v2915_v50 = vmul.f32 %v2899_v6, %v4886_v48  ;;  %v4907_v51 = vmul.f32 0.5, %v2789_v30 }
 0xddf   : > { %v2940_v0 = vmul.f32 0.7978846, %v2924_v57  ;;  %v2942_v2 = vmul.f32 0.7978846, %v2926_v59  ;;  %v2928_v5 = vadd.f32 %v2912_v62, %v4877_v8  ;;  %v2930_v13 = vadd.f32 %v2914_v3, %v4880_v38 }
 0xde0   : > { %v2929_v22 = vadd.f32 %v2913_v9, %v4883_v47  ;;  %v2941_v23 = vmul.f32 0.7978846, %v2925_v10  ;;  %v2927_v32 = vadd.f32 %v2911_v11, %v4872_v39  ;;  %v2862_v53 = vmul.f32 0.5, %v2842_v31 }
 0xde1   : > { %4289 = vtanh.f32 %v2940_v0  ;;  %v2944_v17 = vmul.f32 0.7978846, %v2928_v5  ;;  %v2946_v21 = vmul.f32 0.7978846, %v2930_v13  ;;  %v2931_v37 = vadd.f32 %v2915_v50, %v4886_v48 }
 0xde2   : > { %4291 = vtanh.f32 %v2942_v2  ;;  %v2945_v42 = vmul.f32 0.7978846, %v2929_v22  ;;  %v2866_v2 = vmul.f32 0.5, %v4880_v38 }
 0xde3   : > { %4293 = vtanh.f32 %v2944_v17  ;;  %v2947_v59 = vmul.f32 0.7978846, %v2931_v37 }
 0xde4   : > { %v2798_v12 = vpop.f32.mrb[28].mxu0  ;;  %v2851_v56 = vpop.f32.mrb[28].mxu1  ;;  %4295 = vtanh.f32 %v2946_v21 }
 0xde5   : > { %v4911_v24 = vadd.f32 %v2798_v12, %v4856_v58  ;;  %v4914_v25 = vadd.f32 %v2851_v56, %v4858_v7  ;;  %v2800_v28 = vpop.f32.mrb[29].mxu0  ;;  %v2853_v29 = vpop.f32.mrb[29].mxu1  ;;  %4297 = vtanh.f32 %v2941_v23 }
 0xde6   : > { %v4918_v30 = vadd.f32 %v2800_v28, %v4862_v26  ;;  %v4921_v4 = vadd.f32 %v2853_v29, %v4864_v27  ;;  %v2802_v36 = vpop.f32.mrb[30].mxu0  ;;  %v2855_v44 = vpop.f32.mrb[30].mxu1  ;;  %4299 = vtanh.f32 %v2945_v42 }
 0xde7   : > { %v2884_v1 = vmul.f32 0.044715, %v4911_v24  ;;  %v2886_v18 = vmul.f32 0.044715, %v4914_v25  ;;  %v4927_v40 = vadd.f32 %v2802_v36, %v4856_v58  ;;  %v4930_v43 = vadd.f32 %v2855_v44, %v4858_v7  ;;  %v2804_v31 = vpop.f32.mrb[31].mxu0  ;;  %v2857_v45 = vpop.f32.mrb[31].mxu1 }
 0xde8   : > { %v2885_v46 = vmul.f32 0.044715, %v4918_v30  ;;  %v2887_v14 = vmul.f32 0.044715, %v4921_v4  ;;  %v4935_v34 = vadd.f32 %v2804_v31, %v4862_v26  ;;  %v4938_v16 = vadd.f32 %v2857_v45, %v4864_v27 }
 0xde9   : > { %v2888_v49 = vmul.f32 0.044715, %v4927_v40  ;;  %v2943_v58 = vmul.f32 0.7978846, %v2927_v32  ;;  %v2864_v26 = vmul.f32 0.5, %v4877_v8  ;;  %v2900_v57 = vmul.f32 %v2884_v1, %v4911_v24 }
 0xdea   : > { %v2901_v7 = vmul.f32 %v2885_v46, %v4918_v30  ;;  %v2903_v52 = vmul.f32 %v2887_v14, %v4921_v4  ;;  %v2889_v19 = vmul.f32 0.044715, %v4935_v34  ;;  %v2891_v55 = vmul.f32 0.044715, %v4938_v16 }
 0xdeb   : > { %v4290_v41 = vpop.eup %4289  ;;  %v2890_v27 = vmul.f32 0.044715, %v4930_v43  ;;  %v2902_v61 = vmul.f32 %v2886_v18, %v4914_v25  ;;  %v2904_v3 = vmul.f32 %v2888_v49, %v4927_v40  ;;  %4301 = vtanh.f32 %v2943_v58 }
 0xdec   : > { %v4292_v60 = vpop.eup %4291  ;;  %v2917_v62 = vmul.f32 %v2901_v7, %v4918_v30  ;;  %v2905_v63 = vmul.f32 %v2889_v19, %v4935_v34  ;;  %v2907_v0 = vmul.f32 %v2891_v55, %v4938_v16  ;;  %v2972_v8 = vadd.f32 1.0, %v4290_v41 }
 0xded   : > { %v4294_v6 = vpop.eup %4293  ;;  %v2919_v5 = vmul.f32 %v2903_v52, %v4921_v4  ;;  %v2974_v10 = vadd.f32 1.0, %v4292_v60  ;;  %v2906_v13 = vmul.f32 %v2890_v27, %v4930_v43  ;;  %4303 = vtanh.f32 %v2947_v59 }
 0xdee   : > { %v2921_v9 = vmul.f32 %v2905_v63, %v4935_v34  ;;  %v4296_v11 = vpop.eup %4295  ;;  %v2923_v17 = vmul.f32 %v2907_v0, %v4938_v16  ;;  %v2976_v50 = vadd.f32 1.0, %v4294_v6  ;;  %v2916_v38 = vmul.f32 %v2900_v57, %v4911_v24 }
 0xdef   : > { %v2918_v21 = vmul.f32 %v2902_v61, %v4914_v25  ;;  %v2978_v12 = vadd.f32 1.0, %v4296_v11  ;;  %v2933_v56 = vadd.f32 %v2917_v62, %v4918_v30  ;;  %v2920_v22 = vmul.f32 %v2904_v3, %v4927_v40  ;;  %v4298_v1 = vpop.eup %4297 }
 0xdf0   : > { %v2988_v23 = vmul.f32 %v2972_v8, %v4907_v51  ;;  %v2992_v28 = vmul.f32 %v2976_v50, %v2864_v26  ;;  %v2937_v29 = vadd.f32 %v2921_v9, %v4935_v34  ;;  %v2990_v32 = vmul.f32 %v2974_v10, %v2862_v53  ;;  %v4300_v19 = vpop.eup %4299 }
 0xdf1   : > { %v2994_v36 = vmul.f32 %v2978_v12, %v2866_v2  ;;  %v2949_v44 = vmul.f32 0.7978846, %v2933_v56  ;;  %v2935_v37 = vadd.f32 %v2919_v5, %v4921_v4  ;;  %v2922_v18 = vmul.f32 %v2906_v13, %v4930_v43 }
 0xdf2   : > { %v3004_v31 = vpack.c.bf16 %v2992_v28, %v2988_v23  ;;  %v2953_v45 = vmul.f32 0.7978846, %v2937_v29  ;;  %v2939_v46 = vadd.f32 %v2923_v17, %v4938_v16  ;;  %v2861_v51 = vmul.f32 0.5, %v4869_v33 }
 0xdf3   : > { %v3006_v14 = vpack.c.bf16 %v2994_v36, %v2990_v32  ;;  %4305 = vtanh.f32 %v2949_v44  ;;  %v2951_v49 = vmul.f32 0.7978846, %v2935_v37  ;;  %v2932_v53 = vadd.f32 %v2916_v38, %v4911_v24 }
 0xdf4   : > { %4307 = vtanh.f32 %v2953_v45  ;;  %v2955_v42 = vmul.f32 0.7978846, %v2939_v46  ;;  %v2865_v58 = vmul.f32 0.5, %v4883_v47  ;;  %v2973_v7 = vadd.f32 1.0, %v4298_v1 }
 0xdf5   : > { %4309 = vtanh.f32 %v2951_v49  ;;  %v2936_v52 = vadd.f32 %v2920_v22, %v4927_v40  ;;  %v2948_v55 = vmul.f32 0.7978846, %v2932_v53  ;;  %v2934_v41 = vadd.f32 %v2918_v21, %v4914_v25  ;;  %v4302_v57 = vpop.eup %4301 }
 0xdf6   : > { %4311 = vtanh.f32 %v2955_v42  ;;  %v2938_v26 = vadd.f32 %v2922_v18, %v4930_v43  ;;  %v2977_v27 = vadd.f32 1.0, %v4300_v19  ;;  %v2863_v33 = vmul.f32 0.5, %v4872_v39 }
 0xdf7   : > { %v2867_v59 = vmul.f32 0.5, %v4886_v48  ;;  %v2952_v60 = vmul.f32 0.7978846, %v2936_v52  ;;  %v4304_v61 = vpop.eup %4303  ;;  %v2975_v47 = vadd.f32 1.0, %v4302_v57  ;;  %4313 = vtanh.f32 %v2948_v55  ;;  %v3636_v52 = vld [vmem:[%s443_s24] ss:$0 sm:$0xff] }
 0xdf8   : > { %v2950_v62 = vmul.f32 0.7978846, %v2934_v41  ;;  %v2954_v63 = vmul.f32 0.7978846, %v2938_v26  ;;  %v2989_v0 = vmul.f32 %v2973_v7, %v2861_v51  ;;  %v2993_v2 = vmul.f32 %v2977_v27, %v2865_v58 }
 0xdf9   : > { %v2979_v3 = vadd.f32 1.0, %v4304_v61  ;;  %4315 = vtanh.f32 %v2952_v60  ;;  %v2991_v6 = vmul.f32 %v2975_v47, %v2863_v33  ;;  %v2869_v13 = vmul.f32 0.5, %v4918_v30 }
 0xdfa   : > { %4317 = vtanh.f32 %v2950_v62  ;;  %v3005_v8 = vpack.c.bf16 %v2993_v2, %v2989_v0  ;;  %v2873_v17 = vmul.f32 0.5, %v4935_v34  ;;  %v2871_v21 = vmul.f32 0.5, %v4921_v4 }
 0xdfb   : > { %v2995_v5 = vmul.f32 %v2979_v3, %v2867_v59  ;;  %4319 = vtanh.f32 %v2954_v63  ;;  %v2875_v23 = vmul.f32 0.5, %v4938_v16  ;;  %v2868_v34 = vmul.f32 0.5, %v4911_v24 }
 0xdfc   : > { %3307 = vmatprep.mubr.bf16.mxu0 %v3005_v8  ;;  %v2872_v18 = vmul.f32 0.5, %v4927_v40  ;;  %v2870_v46 = vmul.f32 0.5, %v4914_v25  ;;  %v2874_v51 = vmul.f32 0.5, %v4930_v43 }
 0xdfd   : > { %v4306_v9 = vpop.eup %4305  ;;  %v3007_v39 = vpack.c.bf16 %v2995_v5, %v2991_v6  ;;  %3308 = vmatmul.mubr.bf16.vlgmr.msra.gmra.mrb[32].mxu0 %v3004_v31 }
 0xdfe   : > { %v4308_v10 = vpop.eup %4307  ;;  %v2981_v48 = vadd.f32 1.0, %v4306_v9 }
 0xdff   : > { %v4310_v11 = vpop.eup %4309  ;;  %3356 = vmatprep.mubr.bf16.mxu1 %v3007_v39  ;;  %v2985_v50 = vadd.f32 1.0, %v4308_v10 }
 0xe00   : > { %v4312_v38 = vpop.eup %4311  ;;  %3357 = vmatmul.mubr.bf16.vlgmr.msra.gmra.mrb[32].mxu1 %v3006_v14  ;;  %v2983_v12 = vadd.f32 1.0, %v4310_v11  ;;  %v2997_v56 = vmul.f32 %v2981_v48, %v2869_v13 }
 0xe01   : > { %v3001_v22 = vmul.f32 %v2985_v50, %v2873_v17  ;;  %v2987_v28 = vadd.f32 1.0, %v4312_v38  ;;  %v4314_v29 = vpop.eup %4313 }
 0xe02   : > { %v2999_v44 = vmul.f32 %v2983_v12, %v2871_v21  ;;  %v2980_v1 = vadd.f32 1.0, %v4314_v29 }
 0xe03   : > { %v4316_v32 = vpop.eup %4315  ;;  %v3009_v36 = vpack.c.bf16 %v3001_v22, %v2997_v56  ;;  %v3003_v37 = vmul.f32 %v2987_v28, %v2875_v23 }
 0xe04   : > { %v4318_v30 = vpop.eup %4317  ;;  %v2984_v31 = vadd.f32 1.0, %v4316_v32  ;;  %v2996_v14 = vmul.f32 %v2980_v1, %v2868_v34 }
 0xe05   : > { %v4320_v45 = vpop.eup %4319  ;;  %3315 = vmatprep.mubr.bf16.mxu0 %v3009_v36  ;;  %v3011_v4 = vpack.c.bf16 %v3003_v37, %v2999_v44  ;;  %v2982_v16 = vadd.f32 1.0, %v4318_v30 }
 0xe06   : > { %v3000_v49 = vmul.f32 %v2984_v31, %v2872_v18  ;;  %v2986_v42 = vadd.f32 1.0, %v4320_v45 }
 0xe07   : > { %3364 = vmatprep.mubr.bf16.mxu1 %v3011_v4  ;;  %v2998_v58 = vmul.f32 %v2982_v16, %v2870_v46 }
 0xe08   : > { %v3008_v53 = vpack.c.bf16 %v3000_v49, %v2996_v14  ;;  %v3002_v7 = vmul.f32 %v2986_v42, %v2874_v51 }
 0xe0a   : > { %3316 = vmatmul.mubr.bf16.gmra.mrb[36].mxu0 %v3008_v53  ;;  %v3010_v24 = vpack.c.bf16 %v3002_v7, %v2998_v58 }
 0xe0c   : > { %3365 = vmatmul.mubr.bf16.gmra.mrb[36].mxu1 %v3010_v24 }
 0xed0   : > { %v3764_v40 = vpop.f32.mrb[32].mxu0 }
 0xed1   : > { %v3765_v25 = vpop.f32.mrb[33].mxu0 }
 0xed2   : > { %v3766_v55 = vadd.f32 %v3765_v25, %v3764_v40  ;;  %v3767_v41 = vpop.f32.mrb[34].mxu0 }
 0xed3   : > { %v3792_v19 = vpop.f32.mrb[32].mxu1  ;;  %v3768_v26 = vpop.f32.mrb[35].mxu0 }
 0xed4   : > { %v3793_v43 = vpop.f32.mrb[33].mxu1  ;;  %v3310_v57 = vadd.f32 %v3766_v55, %v3636_v52  ;;  %v3769_v59 = vadd.f32 %v3768_v26, %v3767_v41 }
 0xed5   : > { %v3794_v27 = vadd.f32 %v3793_v43, %v3792_v19  ;;  %v3795_v33 = vpop.f32.mrb[34].mxu1 }
 0xed6   : > { %v3796_v60 = vpop.f32.mrb[35].mxu1  ;;  %v3313_v47 = vadd.f32 %v3769_v59, %v3636_v52 }
 0xed7   : > { %v3359_v61 = vadd.f32 %v3794_v27, %v3310_v57  ;;  %v3797_v62 = vadd.f32 %v3796_v60, %v3795_v33 }
 0xed9   : > { %v3373_v63 = vadd.f32 %v3359_v61, %v4766_v15  ;;  %v3362_v0 = vadd.f32 %v3797_v62, %v3313_v47 }
 0xedb   : > { %3377 = vst [vmem:[#allocation2] sm:$0xff] %v3373_v63  ;;  %3381 = vst [vmem:[%s4442_s28] sm:$0xff] %v3373_v63  ;;  %v3374_v2 = vadd.f32 %v3362_v0, %v4763_v35 }
 0xedd   : > { %3378 = vst [vmem:[#allocation2 + $0x8] sm:$0xff] %v3374_v2  ;;  %3382 = vst [vmem:[%s4442_s28 + $0x8] sm:$0xff] %v3374_v2  ;;  %v3770_v3 = vpop.f32.mrb[36].mxu0 }
 0xede   : > { %v3771_v8 = vpop.f32.mrb[37].mxu0 }
 0xedf   : > { %v3798_v6 = vpop.f32.mrb[36].mxu1  ;;  %v3772_v5 = vadd.f32 %v3771_v8, %v3770_v3  ;;  %v3773_v9 = vpop.f32.mrb[38].mxu0 }
 0xee0   : > { %v3799_v39 = vpop.f32.mrb[37].mxu1  ;;  %v3774_v10 = vpop.f32.mrb[39].mxu0 }
 0xee1   : > { %v3318_v48 = vadd.f32 %v3772_v5, %v3636_v52  ;;  %v3800_v11 = vadd.f32 %v3799_v39, %v3798_v6  ;;  %v3801_v13 = vpop.f32.mrb[38].mxu1  ;;  %v3775_v15 = vadd.f32 %v3774_v10, %v3773_v9 }
 0xee2   : > { %v3802_v17 = vpop.f32.mrb[39].mxu1 }
 0xee3   : > { %v3367_v50 = vadd.f32 %v3800_v11, %v3318_v48  ;;  %v3321_v38 = vadd.f32 %v3775_v15, %v3636_v52  ;;  %v3803_v21 = vadd.f32 %v3802_v17, %v3801_v13 }
 0xee5   : > { %v3375_v35 = vadd.f32 %v3367_v50, %v4780_v54  ;;  %v3370_v12 = vadd.f32 %v3803_v21, %v3321_v38 }
 0xee7   : > { %3379 = vst [vmem:[#allocation2 + $0x10] sm:$0xff] %v3375_v35  ;;  %3383 = vst [vmem:[%s4442_s28 + $0x10] sm:$0xff] %v3375_v35  ;;  %v3376_v56 = vadd.f32 %v3370_v12, %v4782_v20 }
 0xee9   : > { %3380 = vst [vmem:[#allocation2 + $0x18] sm:$0xff] %v3376_v56  ;;  %3384 = vst [vmem:[%s4442_s28 + $0x18] sm:$0xff] %v3376_v56 }
 0xeea PF: > { %s19_s30 = sadd.s32 1, %s4331_s30  }
 0xeeb   : > { %p16_p5 = scmp.ge.s32.totalorder %s19_s30, 4  }
 0xeed   :  { %18 = sbr.rel (!%p16_p5) target bundleno = 2 (0x2), region = 111 }

</bundles_post_ra>
